<compile_context>
chip_gen: v7x
topology: tpu7x:2x2x1
jax: 0.10.0
libtpu: 0.0.40
codegen_flags: <defaults>
</compile_context>

<pallas_src>
import math
from functools import partial

import jax
import jax.numpy as jnp
from jax.experimental import pallas as pl
from jax.experimental.pallas import tpu as pltpu


def _round_up(n, m):
    return ((n + m - 1) // m) * m


# ----------------------------- in-kernel math ------------------------------

def _layernorm(x, g, b, eps=1e-5):
    # E[x^2] - E[x]^2 form: the two lane reductions are independent and can
    # co-issue on the XLU units instead of serializing (centered form).
    mu = jnp.mean(x, axis=-1, keepdims=True)
    musq = jnp.mean(x * x, axis=-1, keepdims=True)
    var = jnp.maximum(musq - mu * mu, 0.0)
    return (x - mu) * jax.lax.rsqrt(var + eps) * g + b


def _erf(x):
    # TODO(synk): lax.erf has no guaranteed Mosaic lowering; exact (erf-based)
    # GELU uses the Abramowitz & Stegun 7.1.26 polynomial (|err| < 1.5e-7),
    # with the divide moved to the EUP via an approximate reciprocal.
    a1, a2, a3, a4, a5 = 0.254829592, -0.284496736, 1.421413741, -1.453152027, 1.061405429
    p = 0.3275911
    s = jnp.where(x >= 0.0, 1.0, -1.0)
    z = jnp.abs(x)
    t = pl.reciprocal(1.0 + p * z, approx=True)                 # EUP slot
    poly = ((((a5 * t + a4) * t + a3) * t + a2) * t + a1) * t
    return s * (1.0 - poly * jnp.exp(-z * z))


def _gelu(x):
    # nn.GELU() default (approximate='none') -> exact erf-based GELU.
    return 0.5 * x * (1.0 + _erf(x * (1.0 / math.sqrt(2.0))))


# --------------------------------- kernel ----------------------------------
# Row layout of the packed bias/gamma sub-block of the slab.
_R_BPE, _R_G0, _R_BE0, _R_G1, _R_BE1, _R_G2, _R_BE2 = 0, 1, 2, 3, 4, 5, 6
_R_BQ, _R_BK, _R_BV, _R_BO, _R_BM1, _R_BFOLD = 7, 8, 9, 10, 11, 12


def _swin_unet_kernel(B, L, E, offs, patches_ref, slab_ref, out_ref):
    E3, E4 = 3 * E, 4 * E
    Wq = B * B * E                      # lane width of the packed attn slabs
    dec_pad = out_ref.shape[1]

    # ---- static slices out of the single packed weight/vector slab ---------
    w_pe = slab_ref[offs["w_pe"]:offs["w_pe"] + offs["pe_rows"], 0:E]
    w_qkv = slab_ref[offs["w_qkv"]:offs["w_qkv"] + E, 0:E3]
    hbd = slab_ref[offs["hbd"]:offs["hbd"] + Wq, 0:Wq]
    w_o = slab_ref[offs["w_o"]:offs["w_o"] + E, 0:E]
    w_m1 = slab_ref[offs["w_m1"]:offs["w_m1"] + E, 0:E4]
    w_dec = slab_ref[offs["w_dec"]:offs["w_dec"] + E, 0:dec_pad]
    w_m2d = slab_ref[offs["w_m2d"]:offs["w_m2d"] + E4, 0:dec_pad]
    vecs = slab_ref[offs["vecs"]:offs["vecs"] + offs["vec_rows"], :]

    b_pe = vecs[_R_BPE:_R_BPE + 1, 0:E]
    g0, be0 = vecs[_R_G0:_R_G0 + 1, 0:E], vecs[_R_BE0:_R_BE0 + 1, 0:E]
    g1, be1 = vecs[_R_G1:_R_G1 + 1, 0:E], vecs[_R_BE1:_R_BE1 + 1, 0:E]
    g2, be2 = vecs[_R_G2:_R_G2 + 1, 0:E], vecs[_R_BE2:_R_BE2 + 1, 0:E]
    bq_w = vecs[_R_BQ:_R_BQ + 1, 0:Wq]
    bk_w = vecs[_R_BK:_R_BK + 1, 0:Wq]
    bv_w = vecs[_R_BV:_R_BV + 1, 0:Wq]
    b_o = vecs[_R_BO:_R_BO + 1, 0:E]
    b_m1 = vecs[_R_BM1:_R_BM1 + 1, 0:E4]
    b_fold = vecs[_R_BFOLD:_R_BFOLD + 1, 0:dec_pad]

    # ---- PatchEmbed: conv-as-matmul (lane-padded input) + bias + LayerNorm --
    x = jnp.dot(patches_ref[...], w_pe, preferred_element_type=jnp.float32) + b_pe
    x = _layernorm(x, g0, be0)                                  # (N, E)

    # ---- SwinTransformerBlock attention -------------------------------------
    # nn.MultiheadAttention (batch_first=False): sequence axis = B, batch = L.
    xn = _layernorm(x, g1, be1)
    qkv = jnp.dot(xn, w_qkv, preferred_element_type=jnp.float32)    # (N, 3E)

    # Lane-pack the B*B pairwise products into one (L, B*B*E) fully dense
    # slab; lane group g = b2*B + b1 (b2 = key batch, b1 = query batch).
    q_blk = [qkv[b * L:(b + 1) * L, 0:E] for b in range(B)]
    k_blk = [qkv[b * L:(b + 1) * L, E:2 * E] for b in range(B)]
    v_blk = [qkv[b * L:(b + 1) * L, 2 * E:3 * E] for b in range(B)]
    q_wide = jnp.concatenate([q_blk[g % B] for g in range(B * B)], axis=1) + bq_w
    k_wide = jnp.concatenate([k_blk[g // B] for g in range(B * B)], axis=1) + bk_w
    v_wide = jnp.concatenate([v_blk[g // B] for g in range(B * B)], axis=1) + bv_w

    # One dot against the per-(b1,b2,head) block-diagonal ones matrix: sums
    # each head's channels AND broadcasts the score back across them.
    s = jnp.dot(q_wide * k_wide, hbd, preferred_element_type=jnp.float32)

    def reduce_b2(val, op):
        # Combine the B lane-groups that share b1 (lane shifts by multiples of
        # B*E stay within the same b1 — XLU slot, otherwise idle here).
        r = val
        for j in range(1, B):
            r = op(r, pltpu.roll(val, j * B * E, 1))
        return r

    m = reduce_b2(s, jnp.maximum)
    e = jnp.exp(s - m)
    den = reduce_b2(e, jnp.add)
    p = e * pl.reciprocal(den, approx=True)                     # EUP slot
    acc = reduce_b2(p * v_wide, jnp.add)                        # (L, B*B*E)
    # lanes [b1*E:(b1+1)*E] of acc hold the attention output for batch b1.
    attn = jnp.concatenate([acc[:, b1 * E:(b1 + 1) * E] for b1 in range(B)],
                           axis=0)                              # (N, E)

    # ---- epilogue: out-proj, residual, LN, MLP (w_m2 folded into decoder) ---
    a = jnp.dot(attn, w_o, preferred_element_type=jnp.float32) + b_o
    x2 = x + a                                                  # residual 1
    # decoder contribution of x2 issued early so the MXU overlaps the GELU.
    dec_a = jnp.dot(x2, w_dec, preferred_element_type=jnp.float32)
    h = jnp.dot(_layernorm(x2, g2, be2), w_m1,
                preferred_element_type=jnp.float32) + b_m1      # (N, 4E)
    h = _gelu(h)
    # (x2 + mlp(x2)) @ w_dec + b_dec == x2@w_dec + gelu(h1)@(w_m2@w_dec) + b_fold
    out_ref[...] = dec_a + jnp.dot(h, w_m2d,
                                   preferred_element_type=jnp.float32) + b_fold


# ------------------------------ JAX wrapper ---------------------------------

def swin_unet_forward(x_img, packed, *, patch=4, num_classes=1):
    B, Cin, Hi, Wi = x_img.shape
    assert B == packed["B"]
    Hp, Wp = Hi // patch, Wi // patch
    L = Hp * Wp
    N = B * L
    E = packed["E"]
    offs = packed["offs"]
    pe_in = Cin * patch * patch
    pe_pad = offs["pe_rows"]
    dec_out = num_classes * patch * patch
    dec_pad = packed["dec_pad"]

    # patchify (glue): (B*L, Cin*patch*patch) with per-patch ordering (c,kh,kw),
    # zero-padded to a lane-dense 128-wide slab.
    xp = x_img.reshape(B, Cin, Hp, patch, Wp, patch)
    xp = xp.transpose(0, 2, 4, 1, 3, 5).reshape(N, pe_in)
    xp = jnp.pad(xp, ((0, 0), (0, pe_pad - pe_in)))

    out_pad = pl.pallas_call(
        partial(_swin_unet_kernel, B, L, E, offs),
        out_shape=jax.ShapeDtypeStruct((N, dec_pad), jnp.float32),
        in_specs=[pl.BlockSpec(memory_space=pltpu.MemorySpace.VMEM)] * 2,
        out_specs=pl.BlockSpec(memory_space=pltpu.MemorySpace.VMEM),
    )(xp, packed["slab"])

    # unpatchify (glue): slice the padded lanes, then -> (B, nc, H, W)
    out_flat = out_pad[:, :dec_out]
    y = out_flat.reshape(B, Hp, Wp, num_classes, patch, patch)
    y = y.transpose(0, 3, 1, 4, 2, 5).reshape(B, num_classes, Hp * patch, Wp * patch)
    return y


# -------------------- one-time parameter fusion / packing -------------------

def pack_params(prm, *, num_heads=4, batch=2):
    """Fuse QKV (1/sqrt(hd) folded in), fold w_m2@w_dec, build the lane-packed
    attention ones-matrix, and pack EVERYTHING into one (rows, 128) slab."""
    E = prm["w_pe"].shape[1]
    assert E % num_heads == 0
    hd = E // num_heads
    scale = 1.0 / math.sqrt(hd)
    B = batch
    Wq = B * B * E
    E4 = 4 * E

    pe_in = prm["w_pe"].shape[0]
    pe_pad = _round_up(pe_in, 128)

    dec_out = prm["w_dec"].shape[1]
    dec_pad = _round_up(dec_out, 128)
    w_dec = jnp.pad(prm["w_dec"], ((0, 0), (0, dec_pad - dec_out)))   # (E, dec_pad)
    b_dec = jnp.pad(prm["b_dec"], ((0, 0), (0, dec_pad - dec_out)))   # (1, dec_pad)

    # fold MLP second matmul into the decoder.
    w_m2d = prm["w_m2"] @ w_dec                                       # (4E, dec_pad)
    b_fold = prm["b_m2"] @ w_dec + b_dec                              # (1, dec_pad)

    # fused QKV projection with 1/sqrt(hd) folded into the q half.
    w_qkv = jnp.concatenate([prm["w_q"] * scale, prm["w_k"], prm["w_v"]], axis=1)

    # per-(b1,b2,head) block-diagonal ones matrix for the lane-packed scores.
    hbd = jnp.kron(jnp.eye(B * B * num_heads, dtype=jnp.float32),
                   jnp.ones((hd, hd), jnp.float32))                   # (Wq, Wq)

    W = max(128, Wq, 3 * E, E4, dec_pad)

    def vrow(v):
        v = v.reshape(1, -1)
        return jnp.pad(v, ((0, 0), (0, W - v.shape[1])))

    vecs = jnp.concatenate([
        vrow(prm["b_pe"]),
        vrow(prm["g0"]), vrow(prm["be0"]),
        vrow(prm["g1"]), vrow(prm["be1"]),
        vrow(prm["g2"]), vrow(prm["be2"]),
        vrow(jnp.tile(prm["b_q"] * scale, (1, B * B))),   # bias tiled to (1, Wq)
        vrow(jnp.tile(prm["b_k"], (1, B * B))),
        vrow(jnp.tile(prm["b_v"], (1, B * B))),
        vrow(prm["b_o"]),
        vrow(prm["b_m1"]),
        vrow(b_fold),
    ], axis=0)
    vec_rows = _round_up(vecs.shape[0], 8)
    vecs = jnp.pad(vecs, ((0, vec_rows - vecs.shape[0]), (0, 0)))     # (vec_rows, W)

    # ---- single packed slab: every block 8-row aligned, W lanes wide --------
    blocks = [
        ("w_pe", jnp.pad(prm["w_pe"], ((0, pe_pad - pe_in), (0, 0)))),
        ("w_qkv", w_qkv),
        ("hbd", hbd),
        ("w_o", prm["w_o"]),
        ("w_m1", prm["w_m1"]),
        ("w_dec", w_dec),
        ("w_m2d", w_m2d),
        ("vecs", vecs),
    ]
    offs, padded, row = {}, [], 0
    for name, blk in blocks:
        r, c = blk.shape
        rp = _round_up(r, 8)
        padded.append(jnp.pad(blk, ((0, rp - r), (0, W - c))))
        offs[name] = row
        row += rp
    offs["pe_rows"] = pe_pad
    offs["vec_rows"] = vec_rows
    slab = jnp.concatenate(padded, axis=0)                            # (rows, W)

    return dict(slab=slab, offs=offs, E=E, B=B, dec_pad=dec_pad)


# --------------------- deterministic parameter init -------------------------

def init_params(key, *, in_chans=6, embed_dim=32, num_heads=4, num_classes=1, patch=4):
    E = embed_dim
    ks = jax.random.split(key, 12)

    def nrm(k, shape, scale=0.02):
        return scale * jax.random.normal(k, shape, dtype=jnp.float32)

    # PyTorch-layout tensors (documenting the module's parameter shapes)
    conv_w = nrm(ks[0], (E, in_chans, patch, patch))        # Conv2d.weight
    conv_b = nrm(ks[1], (E,))                               # Conv2d.bias
    in_proj_w = nrm(ks[2], (3 * E, E))                      # MHA.in_proj_weight
    in_proj_b = nrm(ks[3], (3 * E,))                        # MHA.in_proj_bias
    out_proj_w = nrm(ks[4], (E, E))                         # MHA.out_proj.weight
    out_proj_b = nrm(ks[5], (E,))
    m1_w = nrm(ks[6], (4 * E, E))                           # mlp Linear(dim, 4*dim)
    m1_b = nrm(ks[7], (4 * E,))
    m2_w = nrm(ks[8], (E, 4 * E))                           # mlp Linear(4*dim, dim)
    m2_b = nrm(ks[9], (E,))
    dec_w = nrm(ks[10], (E, num_classes, patch, patch))     # ConvTranspose2d.weight
    dec_b = nrm(ks[11], (num_classes,))

    ones = jnp.ones((1, E), jnp.float32)
    zeros = jnp.zeros((1, E), jnp.float32)

    return dict(
        w_pe=conv_w.reshape(E, in_chans * patch * patch).T, b_pe=conv_b.reshape(1, E),
        g0=ones, be0=zeros,                                  # patch_embed.norm
        g1=ones, be1=zeros,                                  # block.norm1
        g2=ones, be2=zeros,                                  # block.norm2
        w_q=in_proj_w[:E].T, b_q=in_proj_b[:E].reshape(1, E),
        w_k=in_proj_w[E:2 * E].T, b_k=in_proj_b[E:2 * E].reshape(1, E),
        w_v=in_proj_w[2 * E:].T, b_v=in_proj_b[2 * E:].reshape(1, E),
        w_o=out_proj_w.T, b_o=out_proj_b.reshape(1, E),
        w_m1=m1_w.T, b_m1=m1_b.reshape(1, 4 * E),
        w_m2=m2_w.T, b_m2=m2_b.reshape(1, E),
        w_dec=dec_w.reshape(E, num_classes * patch * patch),
        b_dec=jnp.repeat(dec_b, patch * patch).reshape(1, num_classes * patch * patch),
    )


# ----------------------- pure-JAX reference (check) -------------------------

def reference_forward(x_img, prm, *, patch=4, num_heads=4, num_classes=1):
    hp = jax.lax.Precision.HIGHEST
    B, Cin, Hi, Wi = x_img.shape
    Hp, Wp = Hi // patch, Wi // patch
    L = Hp * Wp
    E = prm["w_pe"].shape[1]
    hd = E // num_heads

    xp = x_img.reshape(B, Cin, Hp, patch, Wp, patch).transpose(0, 2, 4, 1, 3, 5)
    xp = xp.reshape(B, L, Cin * patch * patch)

    def ln(v, g, b, eps=1e-5):
        mu = jnp.mean(v, -1, keepdims=True)
        var = jnp.mean((v - mu) ** 2, -1, keepdims=True)
        return (v - mu) / jnp.sqrt(var + eps) * g + b

    mm = lambda a, w: jnp.einsum("...i,ij->...j", a, w, precision=hp)

    x = mm(xp, prm["w_pe"]) + prm["b_pe"][0]
    x = ln(x, prm["g0"][0], prm["be0"][0])
    shortcut = x
    xn = ln(x, prm["g1"][0], prm["be1"][0])
    q = (mm(xn, prm["w_q"]) + prm["b_q"][0]).reshape(B, L, num_heads, hd) / math.sqrt(hd)
    k = (mm(xn, prm["w_k"]) + prm["b_k"][0]).reshape(B, L, num_heads, hd)
    v = (mm(xn, prm["w_v"]) + prm["b_v"][0]).reshape(B, L, num_heads, hd)
    s = jnp.einsum("alhd,blhd->lhab", q, k, precision=hp)    # attention over batch axis
    p = jax.nn.softmax(s, axis=-1)
    ao = jnp.einsum("lhab,blhd->alhd", p, v, precision=hp).reshape(B, L, E)
    ao = mm(ao, prm["w_o"]) + prm["b_o"][0]
    x = shortcut + ao
    h = ln(x, prm["g2"][0], prm["be2"][0])
    h = mm(h, prm["w_m1"]) + prm["b_m1"][0]
    h = jax.nn.gelu(h, approximate=False)
    h = mm(h, prm["w_m2"]) + prm["b_m2"][0]
    x = x + h
    y = mm(x, prm["w_dec"]) + prm["b_dec"][0]
    y = y.reshape(B, Hp, Wp, num_classes, patch, patch).transpose(0, 3, 1, 4, 2, 5)
    return y.reshape(B, num_classes, Hp * patch, Wp * patch)


# ---------------------------------- main -------------------------------------

if __name__ == "__main__":
    key = jax.random.PRNGKey(0)
    k_x, k_p = jax.random.split(key)

    B, Cin, Himg, Wimg = 2, 6, 16, 16
    E, heads, nc, patch = 32, 4, 1, 4

    x = jax.random.normal(k_x, (B, Cin, Himg, Wimg), dtype=jnp.float32)
    prm = init_params(k_p, in_chans=Cin, embed_dim=E, num_heads=heads,
                      num_classes=nc, patch=patch)
    packed = pack_params(prm, num_heads=heads, batch=B)   # one-time fuse/pad/pack

    y = swin_unet_forward(x, packed, patch=patch, num_classes=nc)
    y = jax.block_until_ready(y)
    assert y.shape == (B, nc, Himg, Wimg), y.shape

    y_ref = reference_forward(x, prm, patch=patch, num_heads=heads, num_classes=nc)
    err = float(jnp.max(jnp.abs(y - y_ref)))
    assert err < 2e-3, f"max abs err too large: {err}"

    print("KERNEL_OK")
</pallas_src>

<mosaic_0001>
module attributes {stable_mosaic.version = 11 : i64} {
  func.func @_swin_unet_kernel(%arg0: memref<32x128xf32, #tpu.memory_space<vmem>>, %arg1: memref<528x128xf32, #tpu.memory_space<vmem>>, %arg2: memref<32x128xf32, #tpu.memory_space<vmem>>) attributes {dimension_semantics = [], scalar_prefetch = 0 : i64, scratch_operands = 0 : i64, tpu.core_type = #tpu.core_type<tc>} {
    %c0 = arith.constant 0 : index
    %c0_0 = arith.constant 0 : index
    %0 = vector.load %arg1[%c0, %c0_0] : memref<528x128xf32, #tpu.memory_space<vmem>>, vector<128x32xf32>
    %c128 = arith.constant 128 : index
    %c0_1 = arith.constant 0 : index
    %1 = vector.load %arg1[%c128, %c0_1] : memref<528x128xf32, #tpu.memory_space<vmem>>, vector<32x96xf32>
    %c160 = arith.constant 160 : index
    %c0_2 = arith.constant 0 : index
    %2 = vector.load %arg1[%c160, %c0_2] : memref<528x128xf32, #tpu.memory_space<vmem>>, vector<128x128xf32>
    %c288 = arith.constant 288 : index
    %c0_3 = arith.constant 0 : index
    %3 = vector.load %arg1[%c288, %c0_3] : memref<528x128xf32, #tpu.memory_space<vmem>>, vector<32x32xf32>
    %c320 = arith.constant 320 : index
    %c0_4 = arith.constant 0 : index
    %4 = vector.load %arg1[%c320, %c0_4] : memref<528x128xf32, #tpu.memory_space<vmem>>, vector<32x128xf32>
    %c352 = arith.constant 352 : index
    %c0_5 = arith.constant 0 : index
    %5 = vector.load %arg1[%c352, %c0_5] : memref<528x128xf32, #tpu.memory_space<vmem>>, vector<32x128xf32>
    %c384 = arith.constant 384 : index
    %c0_6 = arith.constant 0 : index
    %6 = vector.load %arg1[%c384, %c0_6] : memref<528x128xf32, #tpu.memory_space<vmem>>, vector<128x128xf32>
    %c512 = arith.constant 512 : index
    %c0_7 = arith.constant 0 : index
    %7 = vector.load %arg1[%c512, %c0_7] : memref<528x128xf32, #tpu.memory_space<vmem>>, vector<16x128xf32>
    %8 = vector.extract_strided_slice %7 {offsets = [0, 0], sizes = [1, 32], strides = [1, 1]} : vector<16x128xf32> to vector<1x32xf32>
    %9 = vector.extract_strided_slice %7 {offsets = [1, 0], sizes = [1, 32], strides = [1, 1]} : vector<16x128xf32> to vector<1x32xf32>
    %10 = vector.extract_strided_slice %7 {offsets = [2, 0], sizes = [1, 32], strides = [1, 1]} : vector<16x128xf32> to vector<1x32xf32>
    %11 = vector.extract_strided_slice %7 {offsets = [3, 0], sizes = [1, 32], strides = [1, 1]} : vector<16x128xf32> to vector<1x32xf32>
    %12 = vector.extract_strided_slice %7 {offsets = [4, 0], sizes = [1, 32], strides = [1, 1]} : vector<16x128xf32> to vector<1x32xf32>
    %13 = vector.extract_strided_slice %7 {offsets = [5, 0], sizes = [1, 32], strides = [1, 1]} : vector<16x128xf32> to vector<1x32xf32>
    %14 = vector.extract_strided_slice %7 {offsets = [6, 0], sizes = [1, 32], strides = [1, 1]} : vector<16x128xf32> to vector<1x32xf32>
    %15 = vector.extract_strided_slice %7 {offsets = [7, 0], sizes = [1, 128], strides = [1, 1]} : vector<16x128xf32> to vector<1x128xf32>
    %16 = vector.extract_strided_slice %7 {offsets = [8, 0], sizes = [1, 128], strides = [1, 1]} : vector<16x128xf32> to vector<1x128xf32>
    %17 = vector.extract_strided_slice %7 {offsets = [9, 0], sizes = [1, 128], strides = [1, 1]} : vector<16x128xf32> to vector<1x128xf32>
    %18 = vector.extract_strided_slice %7 {offsets = [10, 0], sizes = [1, 32], strides = [1, 1]} : vector<16x128xf32> to vector<1x32xf32>
    %19 = vector.extract_strided_slice %7 {offsets = [11, 0], sizes = [1, 128], strides = [1, 1]} : vector<16x128xf32> to vector<1x128xf32>
    %20 = vector.extract_strided_slice %7 {offsets = [12, 0], sizes = [1, 128], strides = [1, 1]} : vector<16x128xf32> to vector<1x128xf32>
    %c0_8 = arith.constant 0 : index
    %c0_9 = arith.constant 0 : index
    %21 = vector.load %arg0[%c0_8, %c0_9] : memref<32x128xf32, #tpu.memory_space<vmem>>, vector<32x128xf32>
    %cst = arith.constant dense<0.000000e+00> : vector<32x32xf32>
    %22 = tpu.matmul %21, %0, %cst {dimension_numbers = #tpu.dot_dimension_numbers<[1], [0], [0], [1], [0, 0, 1, 1], [], []>} : vector<32x128xf32>, vector<128x32xf32>, vector<32x32xf32> -> vector<32x32xf32>
    %23 = vector.broadcast %8 : vector<1x32xf32> to vector<32x32xf32>
    %24 = arith.addf %22, %23 : vector<32x32xf32>
    %cst_10 = arith.constant dense<0.000000e+00> : vector<32xf32>
    %25 = vector.multi_reduction <add>, %24, %cst_10 [1] : vector<32x32xf32> to vector<32xf32>
    %26 = vector.shape_cast %25 : vector<32xf32> to vector<32x1xf32>
    %cst_11 = arith.constant 3.200000e+01 : f32
    %27 = vector.broadcast %cst_11 : f32 to vector<32x1xf32>
    %28 = arith.divf %26, %27 : vector<32x1xf32>
    %29 = arith.mulf %24, %24 : vector<32x32xf32>
    %cst_12 = arith.constant dense<0.000000e+00> : vector<32xf32>
    %30 = vector.multi_reduction <add>, %29, %cst_12 [1] : vector<32x32xf32> to vector<32xf32>
    %31 = vector.shape_cast %30 : vector<32xf32> to vector<32x1xf32>
    %cst_13 = arith.constant 3.200000e+01 : f32
    %32 = vector.broadcast %cst_13 : f32 to vector<32x1xf32>
    %33 = arith.divf %31, %32 : vector<32x1xf32>
    %34 = arith.mulf %28, %28 : vector<32x1xf32>
    %35 = arith.subf %33, %34 : vector<32x1xf32>
    %cst_14 = arith.constant 0.000000e+00 : f32
    %36 = vector.broadcast %cst_14 : f32 to vector<32x1xf32>
    %37 = arith.maximumf %35, %36 : vector<32x1xf32>
    %38 = vector.broadcast %28 : vector<32x1xf32> to vector<32x32xf32>
    %39 = arith.subf %24, %38 : vector<32x32xf32>
    %cst_15 = arith.constant 9.99999974E-6 : f32
    %40 = vector.broadcast %cst_15 : f32 to vector<32x1xf32>
    %41 = arith.addf %37, %40 : vector<32x1xf32>
    %42 = math.rsqrt %41 : vector<32x1xf32>
    %43 = vector.broadcast %42 : vector<32x1xf32> to vector<32x32xf32>
    %44 = arith.mulf %39, %43 : vector<32x32xf32>
    %45 = vector.broadcast %9 : vector<1x32xf32> to vector<32x32xf32>
    %46 = arith.mulf %44, %45 : vector<32x32xf32>
    %47 = vector.broadcast %10 : vector<1x32xf32> to vector<32x32xf32>
    %48 = arith.addf %46, %47 : vector<32x32xf32>
    %cst_16 = arith.constant dense<0.000000e+00> : vector<32xf32>
    %49 = vector.multi_reduction <add>, %48, %cst_16 [1] : vector<32x32xf32> to vector<32xf32>
    %50 = vector.shape_cast %49 : vector<32xf32> to vector<32x1xf32>
    %cst_17 = arith.constant 3.200000e+01 : f32
    %51 = vector.broadcast %cst_17 : f32 to vector<32x1xf32>
    %52 = arith.divf %50, %51 : vector<32x1xf32>
    %53 = arith.mulf %48, %48 : vector<32x32xf32>
    %cst_18 = arith.constant dense<0.000000e+00> : vector<32xf32>
    %54 = vector.multi_reduction <add>, %53, %cst_18 [1] : vector<32x32xf32> to vector<32xf32>
    %55 = vector.shape_cast %54 : vector<32xf32> to vector<32x1xf32>
    %cst_19 = arith.constant 3.200000e+01 : f32
    %56 = vector.broadcast %cst_19 : f32 to vector<32x1xf32>
    %57 = arith.divf %55, %56 : vector<32x1xf32>
    %58 = arith.mulf %52, %52 : vector<32x1xf32>
    %59 = arith.subf %57, %58 : vector<32x1xf32>
    %cst_20 = arith.constant 0.000000e+00 : f32
    %60 = vector.broadcast %cst_20 : f32 to vector<32x1xf32>
    %61 = arith.maximumf %59, %60 : vector<32x1xf32>
    %62 = vector.broadcast %52 : vector<32x1xf32> to vector<32x32xf32>
    %63 = arith.subf %48, %62 : vector<32x32xf32>
    %cst_21 = arith.constant 9.99999974E-6 : f32
    %64 = vector.broadcast %cst_21 : f32 to vector<32x1xf32>
    %65 = arith.addf %61, %64 : vector<32x1xf32>
    %66 = math.rsqrt %65 : vector<32x1xf32>
    %67 = vector.broadcast %66 : vector<32x1xf32> to vector<32x32xf32>
    %68 = arith.mulf %63, %67 : vector<32x32xf32>
    %69 = vector.broadcast %11 : vector<1x32xf32> to vector<32x32xf32>
    %70 = arith.mulf %68, %69 : vector<32x32xf32>
    %71 = vector.broadcast %12 : vector<1x32xf32> to vector<32x32xf32>
    %72 = arith.addf %70, %71 : vector<32x32xf32>
    %cst_22 = arith.constant dense<0.000000e+00> : vector<32x96xf32>
    %73 = tpu.matmul %72, %1, %cst_22 {dimension_numbers = #tpu.dot_dimension_numbers<[1], [0], [0], [1], [0, 0, 1, 1], [], []>} : vector<32x32xf32>, vector<32x96xf32>, vector<32x96xf32> -> vector<32x96xf32>
    %74 = vector.extract_strided_slice %73 {offsets = [0, 0], sizes = [16, 32], strides = [1, 1]} : vector<32x96xf32> to vector<16x32xf32>
    %75 = vector.extract_strided_slice %73 {offsets = [16, 0], sizes = [16, 32], strides = [1, 1]} : vector<32x96xf32> to vector<16x32xf32>
    %76 = vector.extract_strided_slice %73 {offsets = [0, 32], sizes = [16, 32], strides = [1, 1]} : vector<32x96xf32> to vector<16x32xf32>
    %77 = vector.extract_strided_slice %73 {offsets = [16, 32], sizes = [16, 32], strides = [1, 1]} : vector<32x96xf32> to vector<16x32xf32>
    %78 = vector.extract_strided_slice %73 {offsets = [0, 64], sizes = [16, 32], strides = [1, 1]} : vector<32x96xf32> to vector<16x32xf32>
    %79 = vector.extract_strided_slice %73 {offsets = [16, 64], sizes = [16, 32], strides = [1, 1]} : vector<32x96xf32> to vector<16x32xf32>
    %80 = tpu.concatenate %74, %75, %74, %75 in 1 : vector<16x32xf32>, vector<16x32xf32>, vector<16x32xf32>, vector<16x32xf32> -> vector<16x128xf32>
    %81 = vector.broadcast %15 : vector<1x128xf32> to vector<16x128xf32>
    %82 = arith.addf %80, %81 : vector<16x128xf32>
    %83 = tpu.concatenate %76, %76, %77, %77 in 1 : vector<16x32xf32>, vector<16x32xf32>, vector<16x32xf32>, vector<16x32xf32> -> vector<16x128xf32>
    %84 = vector.broadcast %16 : vector<1x128xf32> to vector<16x128xf32>
    %85 = arith.addf %83, %84 : vector<16x128xf32>
    %86 = tpu.concatenate %78, %78, %79, %79 in 1 : vector<16x32xf32>, vector<16x32xf32>, vector<16x32xf32>, vector<16x32xf32> -> vector<16x128xf32>
    %87 = vector.broadcast %17 : vector<1x128xf32> to vector<16x128xf32>
    %88 = arith.addf %86, %87 : vector<16x128xf32>
    %89 = arith.mulf %82, %85 : vector<16x128xf32>
    %cst_23 = arith.constant dense<0.000000e+00> : vector<16x128xf32>
    %90 = tpu.matmul %89, %2, %cst_23 {dimension_numbers = #tpu.dot_dimension_numbers<[1], [0], [0], [1], [0, 0, 1, 1], [], []>} : vector<16x128xf32>, vector<128x128xf32>, vector<16x128xf32> -> vector<16x128xf32>
    %c64_i32 = arith.constant 64 : i32
    %91 = tpu.dynamic_rotate %90 by %c64_i32 dim 1 : vector<16x128xf32>, i32 -> vector<16x128xf32>
    %92 = arith.maximumf %90, %91 : vector<16x128xf32>
    %93 = arith.subf %90, %92 : vector<16x128xf32>
    %94 = math.exp %93 : vector<16x128xf32>
    %c64_i32_24 = arith.constant 64 : i32
    %95 = tpu.dynamic_rotate %94 by %c64_i32_24 dim 1 : vector<16x128xf32>, i32 -> vector<16x128xf32>
    %96 = arith.addf %94, %95 : vector<16x128xf32>
    %97 = tpu.reciprocal %96 {approx = true} : vector<16x128xf32> -> vector<16x128xf32>
    %98 = arith.mulf %94, %97 : vector<16x128xf32>
    %99 = arith.mulf %98, %88 : vector<16x128xf32>
    %c64_i32_25 = arith.constant 64 : i32
    %100 = tpu.dynamic_rotate %99 by %c64_i32_25 dim 1 : vector<16x128xf32>, i32 -> vector<16x128xf32>
    %101 = arith.addf %99, %100 : vector<16x128xf32>
    %102 = vector.extract_strided_slice %101 {offsets = [0, 0], sizes = [16, 32], strides = [1, 1]} : vector<16x128xf32> to vector<16x32xf32>
    %103 = vector.extract_strided_slice %101 {offsets = [0, 32], sizes = [16, 32], strides = [1, 1]} : vector<16x128xf32> to vector<16x32xf32>
    %104 = tpu.concatenate %102, %103 in 0 : vector<16x32xf32>, vector<16x32xf32> -> vector<32x32xf32>
    %cst_26 = arith.constant dense<0.000000e+00> : vector<32x32xf32>
    %105 = tpu.matmul %104, %3, %cst_26 {dimension_numbers = #tpu.dot_dimension_numbers<[1], [0], [0], [1], [0, 0, 1, 1], [], []>} : vector<32x32xf32>, vector<32x32xf32>, vector<32x32xf32> -> vector<32x32xf32>
    %106 = vector.broadcast %18 : vector<1x32xf32> to vector<32x32xf32>
    %107 = arith.addf %105, %106 : vector<32x32xf32>
    %108 = arith.addf %48, %107 : vector<32x32xf32>
    %cst_27 = arith.constant dense<0.000000e+00> : vector<32x128xf32>
    %109 = tpu.matmul %108, %5, %cst_27 {dimension_numbers = #tpu.dot_dimension_numbers<[1], [0], [0], [1], [0, 0, 1, 1], [], []>} : vector<32x32xf32>, vector<32x128xf32>, vector<32x128xf32> -> vector<32x128xf32>
    %cst_28 = arith.constant dense<0.000000e+00> : vector<32xf32>
    %110 = vector.multi_reduction <add>, %108, %cst_28 [1] : vector<32x32xf32> to vector<32xf32>
    %111 = vector.shape_cast %110 : vector<32xf32> to vector<32x1xf32>
    %cst_29 = arith.constant 3.200000e+01 : f32
    %112 = vector.broadcast %cst_29 : f32 to vector<32x1xf32>
    %113 = arith.divf %111, %112 : vector<32x1xf32>
    %114 = arith.mulf %108, %108 : vector<32x32xf32>
    %cst_30 = arith.constant dense<0.000000e+00> : vector<32xf32>
    %115 = vector.multi_reduction <add>, %114, %cst_30 [1] : vector<32x32xf32> to vector<32xf32>
    %116 = vector.shape_cast %115 : vector<32xf32> to vector<32x1xf32>
    %cst_31 = arith.constant 3.200000e+01 : f32
    %117 = vector.broadcast %cst_31 : f32 to vector<32x1xf32>
    %118 = arith.divf %116, %117 : vector<32x1xf32>
    %119 = arith.mulf %113, %113 : vector<32x1xf32>
    %120 = arith.subf %118, %119 : vector<32x1xf32>
    %cst_32 = arith.constant 0.000000e+00 : f32
    %121 = vector.broadcast %cst_32 : f32 to vector<32x1xf32>
    %122 = arith.maximumf %120, %121 : vector<32x1xf32>
    %123 = vector.broadcast %113 : vector<32x1xf32> to vector<32x32xf32>
    %124 = arith.subf %108, %123 : vector<32x32xf32>
    %cst_33 = arith.constant 9.99999974E-6 : f32
    %125 = vector.broadcast %cst_33 : f32 to vector<32x1xf32>
    %126 = arith.addf %122, %125 : vector<32x1xf32>
    %127 = math.rsqrt %126 : vector<32x1xf32>
    %128 = vector.broadcast %127 : vector<32x1xf32> to vector<32x32xf32>
    %129 = arith.mulf %124, %128 : vector<32x32xf32>
    %130 = vector.broadcast %13 : vector<1x32xf32> to vector<32x32xf32>
    %131 = arith.mulf %129, %130 : vector<32x32xf32>
    %132 = vector.broadcast %14 : vector<1x32xf32> to vector<32x32xf32>
    %133 = arith.addf %131, %132 : vector<32x32xf32>
    %cst_34 = arith.constant dense<0.000000e+00> : vector<32x128xf32>
    %134 = tpu.matmul %133, %4, %cst_34 {dimension_numbers = #tpu.dot_dimension_numbers<[1], [0], [0], [1], [0, 0, 1, 1], [], []>} : vector<32x32xf32>, vector<32x128xf32>, vector<32x128xf32> -> vector<32x128xf32>
    %135 = vector.broadcast %19 : vector<1x128xf32> to vector<32x128xf32>
    %136 = arith.addf %134, %135 : vector<32x128xf32>
    %cst_35 = arith.constant 5.000000e-01 : f32
    %137 = vector.broadcast %cst_35 : f32 to vector<32x128xf32>
    %138 = arith.mulf %137, %136 : vector<32x128xf32>
    %cst_36 = arith.constant 0.707106769 : f32
    %139 = vector.broadcast %cst_36 : f32 to vector<32x128xf32>
    %140 = arith.mulf %136, %139 : vector<32x128xf32>
    %cst_37 = arith.constant 0.000000e+00 : f32
    %141 = vector.broadcast %cst_37 : f32 to vector<32x128xf32>
    %142 = arith.cmpf oge, %140, %141 : vector<32x128xf32>
    %cst_38 = arith.constant 1.000000e+00 : f32
    %cst_39 = arith.constant -1.000000e+00 : f32
    %143 = vector.broadcast %cst_38 : f32 to vector<32x128xf32>
    %144 = vector.broadcast %cst_39 : f32 to vector<32x128xf32>
    %145 = arith.select %142, %143, %144 : vector<32x128xi1>, vector<32x128xf32>
    %146 = math.absf %140 : vector<32x128xf32>
    %cst_40 = arith.constant 0.327591091 : f32
    %147 = vector.broadcast %cst_40 : f32 to vector<32x128xf32>
    %148 = arith.mulf %147, %146 : vector<32x128xf32>
    %cst_41 = arith.constant 1.000000e+00 : f32
    %149 = vector.broadcast %cst_41 : f32 to vector<32x128xf32>
    %150 = arith.addf %149, %148 : vector<32x128xf32>
    %151 = tpu.reciprocal %150 {approx = true} : vector<32x128xf32> -> vector<32x128xf32>
    %cst_42 = arith.constant 1.06140542 : f32
    %152 = vector.broadcast %cst_42 : f32 to vector<32x128xf32>
    %153 = arith.mulf %152, %151 : vector<32x128xf32>
    %cst_43 = arith.constant -1.45315206 : f32
    %154 = vector.broadcast %cst_43 : f32 to vector<32x128xf32>
    %155 = arith.addf %153, %154 : vector<32x128xf32>
    %156 = arith.mulf %155, %151 : vector<32x128xf32>
    %cst_44 = arith.constant 1.42141378 : f32
    %157 = vector.broadcast %cst_44 : f32 to vector<32x128xf32>
    %158 = arith.addf %156, %157 : vector<32x128xf32>
    %159 = arith.mulf %158, %151 : vector<32x128xf32>
    %cst_45 = arith.constant -0.284496725 : f32
    %160 = vector.broadcast %cst_45 : f32 to vector<32x128xf32>
    %161 = arith.addf %159, %160 : vector<32x128xf32>
    %162 = arith.mulf %161, %151 : vector<32x128xf32>
    %cst_46 = arith.constant 0.254829586 : f32
    %163 = vector.broadcast %cst_46 : f32 to vector<32x128xf32>
    %164 = arith.addf %162, %163 : vector<32x128xf32>
    %165 = arith.mulf %164, %151 : vector<32x128xf32>
    %cst_47 = arith.constant 0.000000e+00 : f32
    %166 = vector.broadcast %cst_47 : f32 to vector<32x128xf32>
    %167 = arith.subf %166, %146 : vector<32x128xf32>
    %168 = arith.mulf %167, %146 : vector<32x128xf32>
    %169 = math.exp %168 : vector<32x128xf32>
    %170 = arith.mulf %165, %169 : vector<32x128xf32>
    %cst_48 = arith.constant 1.000000e+00 : f32
    %171 = vector.broadcast %cst_48 : f32 to vector<32x128xf32>
    %172 = arith.subf %171, %170 : vector<32x128xf32>
    %173 = arith.mulf %145, %172 : vector<32x128xf32>
    %cst_49 = arith.constant 1.000000e+00 : f32
    %174 = vector.broadcast %cst_49 : f32 to vector<32x128xf32>
    %175 = arith.addf %174, %173 : vector<32x128xf32>
    %176 = arith.mulf %138, %175 : vector<32x128xf32>
    %cst_50 = arith.constant dense<0.000000e+00> : vector<32x128xf32>
    %177 = tpu.matmul %176, %6, %cst_50 {dimension_numbers = #tpu.dot_dimension_numbers<[1], [0], [0], [1], [0, 0, 1, 1], [], []>} : vector<32x128xf32>, vector<128x128xf32>, vector<32x128xf32> -> vector<32x128xf32>
    %178 = arith.addf %109, %177 : vector<32x128xf32>
    %179 = vector.broadcast %20 : vector<1x128xf32> to vector<32x128xf32>
    %180 = arith.addf %178, %179 : vector<32x128xf32>
    %c0_51 = arith.constant 0 : index
    %c0_52 = arith.constant 0 : index
    %181 = vector.load %arg2[%c0_51, %c0_52] : memref<32x128xf32, #tpu.memory_space<vmem>>, vector<32x128xf32>
    tpu.vector_store %arg2[%c0_51, %c0_52], %180 {strides = array<i32>} : memref<32x128xf32, #tpu.memory_space<vmem>>, vector<32x128xf32>,
    return
  }
}

</mosaic_0001>

<bundles_post_ra>
// kernel: tpu_custom_call.1
= control target key start
LH: loop header
LB: loop body
LE: loop exit
PB: predicated region body
PF: predicated region fallthrough
CT: control target
= control target key end

     0   :  { %7 = vsyncpa [#allocation3], 0  ;;  %s2067_s0 = inlined_call_operand.hbm [shape: f32[32,128], index: 0, kind: input, shape index: {}]   ;;  %s2068_s1 = inlined_call_operand.hbm [shape: f32[528,128], index: 1, kind: input, shape index: {}]   ;;  %s2069_s2 = inlined_call_operand.hbm [shape: f32[32,128], index: 2, kind: output, shape index: {}]  }
   0x1   :  { %8 = vsyncpa [#allocation6], 0 }
   0x2   :  { %9 = vsyncpa [#allocation4], 0  ;;  %s1775_s9 = smov [#allocation2]   ;;  %s1703_s13 = scalar_lea.hbm %s2067_s0, 512 }
   0x3   :  { %s15_s10 = sshll.u32 %s1775_s9, 4  ;;  %p1704_p0 = scmp.ne.s32.totalorder %s2067_s0, %s1703_s13  ;;  %s16_s10 = int_to_ptr.vmem [resolvable:$true] %s15_s10 }
   0x4   :  { %p1707_p1 = scmp.lt.u32.totalorder %s1703_s13, %s2067_s0 }
   0x6   :  { %p1709_p2 = pnand %p1707_p1, %p1704_p0 }
   0x8   :  { %1712 = shalt.err (!%p1709_p2)
}
   0x9   :  { %s1713_s18 = scalar_lea.vmem %s16_s10, 512  ;;  %p1718_p4 = scmp.lt.s32.totalorder %s16_s10, %s16_s10 }
   0xa   :  { %p1714_p3 = scmp.ne.s32.totalorder %s16_s10, %s1713_s18  ;;  %p1719_p5 = scmp.lt.s32.totalorder %s1713_s18, %s1713_s18 }
   0xc   :  { %p1720_p6 = por %p1719_p5, %p1718_p4 }
   0xe   :  { %p1721_p7 = pnand %p1720_p6, %p1714_p3 }
  0x10   :  { %1724 = shalt.err (!%p1721_p7)
}
  0x11   :  { %s1776_s19 = smov 128   ;;  %s1777_s20 = smov 8  }
  0x12   :  { %21 = dma.hbm_to_vmem [thread:$0]  %s2067_s0, 512, %s16_s10, [#allocation3], %s1776_s19, %s1776_s19, %s1777_s20  }
  0x13   :  { %s1778_s23 = smov [#allocation5]   ;;  %s1725_s27 = scalar_lea.hbm %s2068_s1, 8448 }
  0x14   :  { %s27_s24 = sshll.u32 %s1778_s23, 4  ;;  %p1726_p8 = scmp.ne.s32.totalorder %s2068_s1, %s1725_s27  ;;  %s28_s24 = int_to_ptr.vmem [resolvable:$true] %s27_s24 }
  0x15   :  { %p1729_p9 = scmp.lt.u32.totalorder %s1725_s27, %s2068_s1 }
  0x17   :  { %p1731_p10 = pnand %p1729_p9, %p1726_p8 }
  0x19   :  { %1734 = shalt.err (!%p1731_p10)
}
  0x1a   :  { %s1735_s4 = scalar_lea.vmem %s28_s24, 8448  ;;  %p1740_p12 = scmp.lt.s32.totalorder %s28_s24, %s28_s24 }
  0x1b   :  { %p1736_p11 = scmp.ne.s32.totalorder %s28_s24, %s1735_s4  ;;  %p1741_p13 = scmp.lt.s32.totalorder %s1735_s4, %s1735_s4 }
  0x1d   :  { %p1742_p0 = por %p1741_p13, %p1740_p12 }
  0x1f   :  { %p1743_p1 = pnand %p1742_p0, %p1736_p11 }
  0x21   :  { %1746 = shalt.err (!%p1743_p1)
}
  0x22   :  { %33 = dma.hbm_to_vmem [thread:$0]  %s2068_s1, 8448, %s28_s24, [#allocation6], %s1776_s19, %s1776_s19, %s1777_s20  }
  0x23   :  { %1769 = dma.done.wait [#allocation3], 512  }
  0x24   :  { %1770 = vsyncadd [#allocation3], 4294966784 }
  0x25   :  { %1771 = dma.done.wait [#allocation6], 8448  }
  0x26   :  { %1772 = vsyncadd [#allocation6], 4294958848  ;;  %v40_v0 = vld [vmem:[#allocation5] sm:$0xff]  ;;  %v41_v1 = vld [vmem:[#allocation5 + $0x8] sm:$0xff]  ;;  %v110_v28 = vlaneseq  ;;  %vm199_vm0 = vcmask 261120   ;;  %s1779_s1 = smov 64  }
  0x27   :  { %v42_v2 = vld [vmem:[#allocation5 + $0x10] sm:$0xff]  ;;  %v1514_v3 = vpack.c.bf16 %v41_v1, %v40_v0  ;;  %v43_v4 = vld [vmem:[#allocation5 + $0x18] sm:$0xff]  ;;  %v44_v6 = vld [vmem:[#allocation5 + $0x20] sm:$0xff]  ;;  %s1780_s6 = smov 96   ;;  %s1781_s7 = smov 32   ;;  %vm482_vm1 = vcmask 523264  }
  0x28   :  { %v1518_v5 = vpack.c.bf16 %v43_v4, %v42_v2  ;;  %v45_v7 = vld [vmem:[#allocation5 + $0x28] sm:$0xff]  ;;  %v106_v9 = vld [vmem:[#allocation2] sm:$0xff]  ;;  %v46_v10 = vld [vmem:[#allocation5 + $0x30] sm:$0xff]  ;;  %v1829_v29 = vshrl.u32 %v110_v28, 7  ;;  %vm485_vm2 = vcmask 785408   ;;  %s1783_s8 = smov [#allocation7]  }
  0x29   :  { %1515 = vmatprep.subr.bf16.mxu0 %v1514_v3  ;;  %v1522_v8 = vpack.c.bf16 %v45_v7, %v44_v6  ;;  %v47_v11 = vld [vmem:[#allocation5 + $0x38] sm:$0xff]  ;;  %1379 = vmatprep.mubr.f32.mxu0 %v106_v9  ;;  %v48_v13 = vld [vmem:[#allocation5 + $0x40] sm:$0xff]  ;;  %v49_v14 = vld [vmem:[#allocation5 + $0x48] sm:$0xff]  ;;  %s1228_s9 = sshll.u32 %s1783_s8, 4  ;;  %s1229_s9 = int_to_ptr.vmem [resolvable:$true] %s1228_s9 }
  0x2a   :  { %1517 = vmatpush3.bf16.msra.mxu0 %v1514_v3  ;;  %v1526_v12 = vpack.c.bf16 %v47_v11, %v46_v10  ;;  %v1530_v15 = vpack.c.bf16 %v49_v14, %v48_v13  ;;  %v50_v16 = vld [vmem:[#allocation5 + $0x50] sm:$0xff]  ;;  %v51_v17 = vld [vmem:[#allocation5 + $0x58] sm:$0xff]  ;;  %v52_v19 = vld [vmem:[#allocation5 + $0x60] sm:$0xff]  ;;  %v112_v30 = vsub.s32 0, %v1829_v29  ;;  %s1747_s10 = scalar_lea.vmem %s1229_s9, 512  ;;  %p1752_p3 = scmp.lt.s32.totalorder %s1229_s9, %s1229_s9 }
  0x2b   :  { %1519 = vmatprep.subr.bf16.mxu0 %v1518_v5  ;;  %v1534_v18 = vpack.c.bf16 %v51_v17, %v50_v16  ;;  %v53_v20 = vld [vmem:[#allocation5 + $0x68] sm:$0xff]  ;;  %v54_v22 = vld [vmem:[#allocation5 + $0x70] sm:$0xff]  ;;  %v55_v23 = vld [vmem:[#allocation5 + $0x78] sm:$0xff]  ;;  %v267_v16 = vsub.s32 1, %v1829_v29  ;;  %p1748_p2 = scmp.ne.s32.totalorder %s1229_s9, %s1747_s10  ;;  %p1753_p4 = scmp.lt.s32.totalorder %s1747_s10, %s1747_s10 }
  0x2c   :  { %v1538_v21 = vpack.c.bf16 %v53_v20, %v52_v19  ;;  %v1542_v24 = vpack.c.bf16 %v55_v23, %v54_v22  ;;  %v107_v25 = vld [vmem:[#allocation2 + $0x8] sm:$0xff]  ;;  %v108_v26 = vld [vmem:[#allocation2 + $0x10] sm:$0xff]  ;;  %v109_v27 = vld [vmem:[#allocation2 + $0x18] sm:$0xff]  ;;  %v275_v19 = vsub.s32 2, %v1829_v29 }
  0x2d   :  { %v1832_v31 = vld [vmem:[#allocation5 + $0x200] sm:$0xff]  ;;  %p1754_p5 = por %p1753_p4, %p1752_p3 }
  0x2e   :  { %1521 = vmatpush3.bf16.msra.mxu0 %v1518_v5  ;;  %v113_v32 = vrot.slane %v1832_v31, %v112_v30  ;;  %v268_v23 = vrot.slane %v1832_v31, %v267_v16 }
  0x2f   :  { %1523 = vmatprep.subr.bf16.mxu0 %v1522_v8  ;;  %p1755_p6 = pnand %p1754_p5, %p1748_p2 }
  0x32   :  { %1525 = vmatpush3.bf16.msra.mxu0 %v1522_v8 }
  0x33   :  { %1527 = vmatprep.subr.bf16.mxu0 %v1526_v12 }
  0x36   :  { %1529 = vmatpush3.bf16.msra.mxu0 %v1526_v12 }
  0x37   :  { %1531 = vmatprep.subr.bf16.mxu0 %v1530_v15 }
  0x3a   :  { %1533 = vmatpush3.bf16.msra.mxu0 %v1530_v15 }
  0x3b   :  { %1535 = vmatprep.subr.bf16.mxu0 %v1534_v18 }
  0x3e   :  { %1537 = vmatpush3.bf16.msra.mxu0 %v1534_v18 }
  0x3f   :  { %1539 = vmatprep.subr.bf16.mxu0 %v1538_v21 }
  0x42   :  { %1541 = vmatpush3.bf16.msra.mxu0 %v1538_v21 }
  0x43   :  { %1543 = vmatprep.subr.bf16.mxu0 %v1542_v24 }
  0x46   :  { %1545 = vmatpush3.bf16.msra.mxu0 %v1542_v24 }
  0x49   :  { %1380 = vmatmul.mubr.f32.vlgmr.msra.gmra.mrb[0].mxu0 %v107_v25 }
  0x4a   :  { %1382 = vmatprep.mubr.f32.mxu0 %v108_v26 }
  0x4d   :  { %1383 = vmatmul.mubr.f32.gmra.mrb[2].mxu0 %v109_v27  ;;  %v276_v27 = vrot.slane %v1832_v31, %v275_v19 }
 0x11c   :  { %v1381_v33 = vpop.f32.mrb[0].mxu0 }
 0x11d   :  { %v1837_v34 = vadd.f32 %v1381_v33, %v113_v32  ;;  %v180_v35 = vpop.f32.mrb[1].mxu0 }
 0x11e   :  { %v1839_v36 = vadd.f32 %v180_v35, %v113_v32 }
 0x11f   :  { %v203_v37 = vsel %vm199_vm0, %v1837_v34, 0.0  ;;  %v218_v38 = vmul.f32 %v1837_v34, %v1837_v34 }
 0x120   :  { %204 = vadd.xlane.f32.xlu0 %v203_v37  ;;  %v1384_v39 = vpop.f32.mrb[2].mxu0  ;;  %v217_v42 = vmul.f32 %v1839_v36, %v1839_v36  ;;  %v200_v45 = vsel %vm199_vm0, %v1839_v36, 0.0 }
 0x121   :  { %v224_v40 = vsel %vm199_vm0, %v218_v38, 0.0  ;;  %v190_v41 = vpop.f32.mrb[3].mxu0  ;;  %v1850_v44 = vadd.f32 %v1384_v39, %v113_v32 }
 0x122   :  { %225 = vadd.xlane.f32.xlu1 %v224_v40  ;;  %v1848_v43 = vadd.f32 %v190_v41, %v113_v32  ;;  %v221_v46 = vsel %vm199_vm0, %v217_v42, 0.0 }
 0x123   :  { %v209_v49 = vsel %vm199_vm0, %v1850_v44, 0.0  ;;  %v220_v50 = vmul.f32 %v1850_v44, %v1850_v44 }
 0x124   :  { %201 = vadd.xlane.f32.xlu0 %v200_v45  ;;  %v206_v47 = vsel %vm199_vm0, %v1848_v43, 0.0  ;;  %v219_v48 = vmul.f32 %v1848_v43, %v1848_v43 }
 0x125   :  { %v230_v52 = vsel %vm199_vm0, %v220_v50, 0.0 }
 0x126   :  { %222 = vadd.xlane.f32.xlu1 %v221_v46  ;;  %v227_v51 = vsel %vm199_vm0, %v219_v48, 0.0 }
 0x128   :  { %207 = vadd.xlane.f32.xlu0 %v206_v47 }
 0x12a   :  { %210 = vadd.xlane.f32.xlu1 %v209_v49 }
 0x12c   :  { %228 = vadd.xlane.f32.xlu0 %v227_v51 }
 0x12e   :  { %231 = vadd.xlane.f32.xlu1 %v230_v52 }
 0x1ad   :  { %v205_v53 = vpop.xlane.xlu0 %204 }
 0x1ae   :  { %v214_v54 = vmul.f32 0.03125, %v205_v53 }
 0x1af   :  { %v226_v55 = vpop.xlane.xlu1 %225 }
 0x1b0   :  { %v238_v56 = vmul.f32 %v214_v54, %v214_v54  ;;  %v234_v57 = vmul.f32 0.03125, %v226_v55  ;;  %v250_v22 = vsub.f32 %v1837_v34, %v214_v54 }
 0x1b1   :  { %v202_v58 = vpop.xlane.xlu0 %201 }
 0x1b2   :  { %v242_v59 = vsub.f32 %v234_v57, %v238_v56  ;;  %v213_v60 = vmul.f32 0.03125, %v202_v58 }
 0x1b3   :  { %v223_v61 = vpop.xlane.xlu1 %222 }
 0x1b4   :  { %v246_v62 = vmax.f32 %v242_v59, 0.0  ;;  %v237_v63 = vmul.f32 %v213_v60, %v213_v60  ;;  %v233_v0 = vmul.f32 0.03125, %v223_v61  ;;  %v249_v28 = vsub.f32 %v1839_v36, %v213_v60  ;;  %v56_v60 = vld [vmem:[#allocation5 + $0x80] sm:$0xff]  ;;  %v57_v61 = vld [vmem:[#allocation5 + $0x88] sm:$0xff] }
 0x1b5   :  { %v208_v1 = vpop.xlane.xlu0 %207 }
 0x1b6   :  { %v254_v2 = vadd.f32 1e-05, %v246_v62  ;;  %v241_v3 = vsub.f32 %v233_v0, %v237_v63  ;;  %v215_v4 = vmul.f32 0.03125, %v208_v1  ;;  %v1546_v62 = vpack.c.bf16 %v57_v61, %v56_v60  ;;  %v58_v63 = vld [vmem:[#allocation5 + $0x90] sm:$0xff]  ;;  %v59_v0 = vld [vmem:[#allocation5 + $0x98] sm:$0xff] }
 0x1b7   :  { %v211_v5 = vpop.xlane.xlu1 %210  ;;  %v1550_v1 = vpack.c.bf16 %v59_v0, %v58_v63 }
 0x1b8   :  { %1655 = vrsqrt.f32 %v254_v2  ;;  %v245_v6 = vmax.f32 %v241_v3, 0.0  ;;  %v239_v7 = vmul.f32 %v215_v4, %v215_v4  ;;  %v216_v8 = vmul.f32 0.03125, %v211_v5  ;;  %1547 = vmatprep.subr.bf16.mxu0 %v1546_v62 }
 0x1b9   :  { %v229_v9 = vpop.xlane.xlu0 %228  ;;  %v251_v40 = vsub.f32 %v1848_v43, %v215_v4  ;;  %1549 = vmatpush3.bf16.msra.mxu0 %v1546_v62 }
 0x1ba   :  { %v253_v10 = vadd.f32 1e-05, %v245_v6  ;;  %v235_v11 = vmul.f32 0.03125, %v229_v9  ;;  %v240_v12 = vmul.f32 %v216_v8, %v216_v8  ;;  %v252_v36 = vsub.f32 %v1850_v44, %v216_v8  ;;  %1551 = vmatprep.subr.bf16.mxu0 %v1550_v1 }
 0x1bb   :  { %v232_v13 = vpop.xlane.xlu1 %231 }
 0x1bc   :  { %1657 = vrsqrt.f32 %v253_v10  ;;  %v243_v14 = vsub.f32 %v235_v11, %v239_v7  ;;  %v236_v15 = vmul.f32 0.03125, %v232_v13 }
 0x1bd   :  { %1553 = vmatpush3.bf16.msra.mxu0 %v1550_v1 }
 0x1be   :  { %v247_v17 = vmax.f32 %v243_v14, 0.0  ;;  %v244_v18 = vsub.f32 %v236_v15, %v240_v12 }
 0x1c0   :  { %v255_v20 = vadd.f32 1e-05, %v247_v17  ;;  %v248_v21 = vmax.f32 %v244_v18, 0.0 }
 0x1c2   :  { %v1656_v24 = vpop.eup %1655  ;;  %1659 = vrsqrt.f32 %v255_v20  ;;  %v256_v25 = vadd.f32 1e-05, %v248_v21 }
 0x1c3   :  { %v262_v26 = vmul.f32 %v1656_v24, %v250_v22 }
 0x1c4   :  { %1661 = vrsqrt.f32 %v256_v25 }
 0x1c5   :  { %v270_v32 = vmul.f32 %v268_v23, %v262_v26 }
 0x1c6   :  { %v1658_v33 = vpop.eup %1657 }
 0x1c7   :  { %v1875_v35 = vadd.f32 %v276_v27, %v270_v32  ;;  %v261_v34 = vmul.f32 %v1658_v33, %v249_v28 }
 0x1c9   :  { %v284_v37 = vsel %vm199_vm0, %v1875_v35, 0.0  ;;  %v298_v38 = vmul.f32 %v1875_v35, %v1875_v35  ;;  %v269_v39 = vmul.f32 %v268_v23, %v261_v34 }
 0x1ca   :  { %285 = vadd.xlane.f32.xlu1 %v284_v37  ;;  %v347_v37 = vsub.s32 3, %v1829_v29 }
 0x1cb   :  { %v1882_v41 = vadd.f32 %v276_v27, %v269_v39  ;;  %v304_v45 = vsel %vm199_vm0, %v298_v38, 0.0 }
 0x1cc   :  { %v1660_v42 = vpop.eup %1659 }
 0x1cd   :  { %v281_v46 = vsel %vm199_vm0, %v1882_v41, 0.0  ;;  %v297_v47 = vmul.f32 %v1882_v41, %v1882_v41  ;;  %v263_v48 = vmul.f32 %v1660_v42, %v251_v40 }
 0x1ce   :  { %v1662_v49 = vpop.eup %1661  ;;  %305 = vadd.xlane.f32.xlu1 %v304_v45  ;;  %282 = vadd.xlane.f32.xlu0 %v281_v46  ;;  %v348_v46 = vrot.slane %v1832_v31, %v347_v37 }
 0x1cf   :  { %v264_v50 = vmul.f32 %v1662_v49, %v252_v36  ;;  %v271_v51 = vmul.f32 %v268_v23, %v263_v48  ;;  %v301_v43 = vsel %vm199_vm0, %v297_v47, 0.0  ;;  %v355_v48 = vsub.s32 4, %v1829_v29 }
 0x1d1   :  { %v272_v52 = vmul.f32 %v268_v23, %v264_v50  ;;  %v1891_v53 = vadd.f32 %v276_v27, %v271_v51 }
 0x1d2   :  { %302 = vadd.xlane.f32.xlu0 %v301_v43 }
 0x1d3   :  { %v1893_v44 = vadd.f32 %v276_v27, %v272_v52  ;;  %v287_v55 = vsel %vm199_vm0, %v1891_v53, 0.0  ;;  %v299_v57 = vmul.f32 %v1891_v53, %v1891_v53  ;;  %v356_v52 = vrot.slane %v1832_v31, %v355_v48 }
 0x1d5   :  { %v290_v54 = vsel %vm199_vm0, %v1893_v44, 0.0  ;;  %v300_v56 = vmul.f32 %v1893_v44, %v1893_v44  ;;  %v307_v59 = vsel %vm199_vm0, %v299_v57, 0.0 }
 0x1d6   :  { %291 = vadd.xlane.f32.xlu1 %v290_v54  ;;  %288 = vadd.xlane.f32.xlu0 %v287_v55 }
 0x1d7   :  { %v310_v58 = vsel %vm199_vm0, %v300_v56, 0.0 }
 0x1da   :  { %311 = vadd.xlane.f32.xlu1 %v310_v58  ;;  %308 = vadd.xlane.f32.xlu0 %v307_v59 }
 0x257   :  { %v286_v2 = vpop.xlane.xlu1 %285 }
 0x258   :  { %v294_v3 = vmul.f32 0.03125, %v286_v2 }
 0x25a   :  { %v318_v6 = vmul.f32 %v294_v3, %v294_v3  ;;  %v330_v42 = vsub.f32 %v1875_v35, %v294_v3  ;;  %v60_v3 = vld [vmem:[#allocation5 + $0xa0] sm:$0xff] }
 0x25b   :  { %v306_v4 = vpop.xlane.xlu1 %305  ;;  %v283_v5 = vpop.xlane.xlu0 %282 }
 0x25c   :  { %v314_v7 = vmul.f32 0.03125, %v306_v4  ;;  %v293_v8 = vmul.f32 0.03125, %v283_v5  ;;  %v61_v4 = vld [vmem:[#allocation5 + $0xa8] sm:$0xff]  ;;  %v62_v5 = vld [vmem:[#allocation5 + $0xb0] sm:$0xff] }
 0x25e   :  { %v322_v9 = vsub.f32 %v314_v7, %v318_v6  ;;  %v317_v12 = vmul.f32 %v293_v8, %v293_v8  ;;  %v329_v49 = vsub.f32 %v1882_v41, %v293_v8  ;;  %v1554_v6 = vpack.c.bf16 %v61_v4, %v60_v3  ;;  %v63_v7 = vld [vmem:[#allocation5 + $0xb8] sm:$0xff] }
 0x25f   :  { %v303_v10 = vpop.xlane.xlu0 %302  ;;  %v1558_v8 = vpack.c.bf16 %v63_v7, %v62_v5 }
 0x260   :  { %v326_v11 = vmax.f32 %v322_v9, 0.0  ;;  %v313_v13 = vmul.f32 0.03125, %v303_v10  ;;  %1555 = vmatprep.subr.bf16.mxu1 %v1554_v6  ;;  %v64_v9 = vld [vmem:[#allocation5 + $0xc0] sm:$0xff]  ;;  %v65_v10 = vld [vmem:[#allocation5 + $0xc8] sm:$0xff] }
 0x261   :  { %1557 = vmatpush3.bf16.msra.mxu1 %v1554_v6 }
 0x262   :  { %v334_v14 = vadd.f32 1e-05, %v326_v11  ;;  %v321_v15 = vsub.f32 %v313_v13, %v317_v12  ;;  %1559 = vmatprep.subr.bf16.mxu1 %v1558_v8  ;;  %v1562_v11 = vpack.c.bf16 %v65_v10, %v64_v9  ;;  %v66_v12 = vld [vmem:[#allocation5 + $0xd0] sm:$0xff]  ;;  %v67_v13 = vld [vmem:[#allocation5 + $0xd8] sm:$0xff] }
 0x263   :  { %v292_v17 = vpop.xlane.xlu1 %291  ;;  %v289_v18 = vpop.xlane.xlu0 %288 }
 0x264   :  { %1663 = vrsqrt.f32 %v334_v14  ;;  %v325_v20 = vmax.f32 %v321_v15, 0.0  ;;  %v296_v21 = vmul.f32 0.03125, %v292_v17  ;;  %v295_v22 = vmul.f32 0.03125, %v289_v18  ;;  %v68_v15 = vld [vmem:[#allocation5 + $0xe0] sm:$0xff]  ;;  %v69_v17 = vld [vmem:[#allocation5 + $0xe8] sm:$0xff] }
 0x265   :  { %1561 = vmatpush3.bf16.msra.mxu1 %v1558_v8  ;;  %v1566_v14 = vpack.c.bf16 %v67_v13, %v66_v12  ;;  %v1570_v18 = vpack.c.bf16 %v69_v17, %v68_v15 }
 0x266   :  { %v333_v23 = vadd.f32 1e-05, %v325_v20  ;;  %v320_v24 = vmul.f32 %v296_v21, %v296_v21  ;;  %v319_v27 = vmul.f32 %v295_v22, %v295_v22  ;;  %v332_v57 = vsub.f32 %v1893_v44, %v296_v21  ;;  %1563 = vmatprep.subr.bf16.mxu1 %v1562_v11  ;;  %v70_v20 = vld [vmem:[#allocation5 + $0xf0] sm:$0xff]  ;;  %v71_v21 = vld [vmem:[#allocation5 + $0xf8] sm:$0xff] }
 0x267   :  { %v312_v25 = vpop.xlane.xlu1 %311  ;;  %v309_v26 = vpop.xlane.xlu0 %308  ;;  %v331_v59 = vsub.f32 %v1891_v53, %v295_v22 }
 0x268   :  { %1665 = vrsqrt.f32 %v333_v23  ;;  %v316_v28 = vmul.f32 0.03125, %v312_v25  ;;  %v315_v32 = vmul.f32 0.03125, %v309_v26  ;;  %v1574_v23 = vpack.c.bf16 %v71_v21, %v70_v20  ;;  %v72_v25 = vld [vmem:[#allocation5 + $0x100] sm:$0xff]  ;;  %v73_v26 = vld [vmem:[#allocation5 + $0x108] sm:$0xff] }
 0x269   :  { %1565 = vmatpush3.bf16.msra.mxu1 %v1562_v11 }
 0x26a   :  { %v324_v33 = vsub.f32 %v316_v28, %v320_v24  ;;  %v323_v34 = vsub.f32 %v315_v32, %v319_v27  ;;  %1567 = vmatprep.subr.bf16.mxu1 %v1566_v14  ;;  %v1578_v27 = vpack.c.bf16 %v73_v26, %v72_v25  ;;  %v74_v28 = vld [vmem:[#allocation5 + $0x110] sm:$0xff]  ;;  %v75_v32 = vld [vmem:[#allocation5 + $0x118] sm:$0xff] }
 0x26c   :  { %v328_v38 = vmax.f32 %v324_v33, 0.0  ;;  %v327_v39 = vmax.f32 %v323_v34, 0.0  ;;  %v1582_v33 = vpack.c.bf16 %v75_v32, %v74_v28  ;;  %v76_v32 = vld [vmem:[#allocation5 + $0x120] sm:$0xff] }
 0x26d   :  { %1569 = vmatpush3.bf16.msra.mxu1 %v1566_v14 }
 0x26e   :  { %v1664_v40 = vpop.eup %1663  ;;  %v336_v36 = vadd.f32 1e-05, %v328_v38  ;;  %v335_v45 = vadd.f32 1e-05, %v327_v39  ;;  %1571 = vmatprep.subr.bf16.mxu1 %v1570_v18 }
 0x26f   :  { %v342_v47 = vmul.f32 %v1664_v40, %v330_v42 }
 0x270   :  { %1667 = vrsqrt.f32 %v336_v36 }
 0x271   :  { %1669 = vrsqrt.f32 %v335_v45  ;;  %v350_v43 = vmul.f32 %v348_v46, %v342_v47  ;;  %1573 = vmatpush3.bf16.msra.mxu1 %v1570_v18 }
 0x272   :  { %v1666_v50 = vpop.eup %1665  ;;  %1575 = vmatprep.subr.bf16.mxu1 %v1574_v23 }
 0x273   :  { %v341_v51 = vmul.f32 %v1666_v50, %v329_v49  ;;  %v358_v56 = vadd.f32 %v356_v52, %v350_v43 }
 0x275   :  { %v349_v54 = vmul.f32 %v348_v46, %v341_v51  ;;  %1577 = vmatpush3.bf16.msra.mxu1 %v1574_v23  ;;  %v490_v51 = vsub.s32 7, %v1829_v29 }
 0x276   :  { %1579 = vmatprep.subr.bf16.mxu1 %v1578_v27 }
 0x277   :  { %v357_v55 = vadd.f32 %v356_v52, %v349_v54 }
 0x279   :  { %1393 = vmatprep.mubr.msk.f32.mxu0 %vm199_vm0, %v357_v55  ;;  %1581 = vmatpush3.bf16.msra.mxu1 %v1578_v27  ;;  %v1938_v55 = vld [vmem:[#allocation5 + $0x208] sm:$0xff] }
 0x27a   :  { %v1668_v58 = vpop.eup %1667  ;;  %1394 = vmatmul.mubr.msk.f32.vlgmr.msra.gmra.mrb[4].mxu0 %vm199_vm0, %v358_v56  ;;  %1583 = vmatprep.subr.bf16.mxu1 %v1582_v33 }
 0x27b   :  { %v1670_v60 = vpop.eup %1669  ;;  %v344_v61 = vmul.f32 %v1668_v58, %v332_v57 }
 0x27c   :  { %v343_v62 = vmul.f32 %v1670_v60, %v331_v59  ;;  %v491_v59 = vrot.slane %v1832_v31, %v490_v51  ;;  %v515_v60 = vrot.slane %v1938_v55, %v112_v30 }
 0x27d   :  { %v352_v63 = vmul.f32 %v348_v46, %v344_v61  ;;  %1585 = vmatpush3.bf16.msra.mxu1 %v1582_v33  ;;  %v77_v33 = vld [vmem:[#allocation5 + $0x128] sm:$0xff] }
 0x27e   :  { %v351_v0 = vmul.f32 %v348_v46, %v343_v62 }
 0x27f   :  { %v360_v1 = vadd.f32 %v356_v52, %v352_v63 }
 0x280   :  { %v359_v2 = vadd.f32 %v356_v52, %v351_v0 }
 0x282   :  { %1396 = vmatprep.mubr.msk.f32.mxu0 %vm199_vm0, %v359_v2 }
 0x283   :  { %1397 = vmatmul.mubr.msk.f32.gmra.mrb[6].mxu0 %vm199_vm0, %v360_v1 }
 0x34d   :  { %v1395_v22 = vpop.f32.mrb[4].mxu0 }
 0x34e   :  { %470 = vrot.lane.b32.xlu1 %v1395_v22, %s1779_s1  ;;  %496 = vrot.lane.b32.xlu0 %v1395_v22, %s1780_s6  ;;  %v439_v24 = vpop.f32.mrb[5].mxu0 }
 0x352   :  { %494 = vrot.lane.b32.xlu1 %v439_v24, %s1780_s6 }
 0x356   :  { %v1398_v34 = vpop.f32.mrb[6].mxu0  ;;  %468 = vrot.lane.b32.xlu1 %v439_v24, %s1779_s1 }
 0x357   :  { %v449_v38 = vpop.f32.mrb[7].mxu0 }
 0x358   :  { %460 = vrot.lane.b32.xlu0 %v449_v38, %s1781_s7 }
 0x35a   :  { %462 = vrot.lane.b32.xlu1 %v1398_v34, %s1781_s7 }
 0x35c   :  { %474 = vrot.lane.b32.xlu0 %v449_v38, %s1780_s6 }
 0x35e   :  { %500 = vrot.lane.b32.xlu1 %v449_v38, %s1779_s1 }
 0x360   :  { %476 = vrot.lane.b32.xlu0 %v1398_v34, %s1780_s6 }
 0x362   :  { %502 = vrot.lane.b32.xlu1 %v1398_v34, %s1779_s1 }
 0x3c0   :  { %v471_v39 = vpop.permute.xlu1 %470  ;;  %v497_v40 = vpop.permute.xlu0 %496 }
 0x3c1   :  { %v519_v42 = vsel %vm199_vm0, %v471_v39, %v497_v40  ;;  %v507_v7 = vsel %vm199_vm0, %v497_v40, %v1395_v22 }
 0x3c2   :  { %v521_v36 = vsel %vm482_vm1, %v519_v42, %v1398_v34  ;;  %v1586_v34 = vpack.c.bf16 %v77_v33, %v76_v32  ;;  %v85_v32 = vld [vmem:[#allocation5 + $0x168] sm:$0xff] }
 0x3c4   :  { %v495_v45 = vpop.permute.xlu1 %494  ;;  %1587 = vmatprep.subr.bf16.mxu0 %v1586_v34 }
 0x3c5   :  { %v506_v61 = vsel %vm199_vm0, %v495_v45, %v439_v24  ;;  %1589 = vmatpush3.bf16.msra.mxu0 %v1586_v34 }
 0x3c8   :  { %v469_v46 = vpop.permute.xlu1 %468 }
 0x3c9   :  { %v518_v47 = vsel %vm199_vm0, %v469_v46, %v495_v45  ;;  %v79_v45 = vld [vmem:[#allocation5 + $0x138] sm:$0xff] }
 0x3ca   :  { %v520_v49 = vsel %vm482_vm1, %v518_v47, %v449_v38  ;;  %v461_v50 = vpop.permute.xlu0 %460  ;;  %v527_v47 = vrot.slane %v1938_v55, %v267_v16 }
 0x3cb   :  { %v480_v43 = vsel %vm199_vm0, %v439_v24, %v461_v50  ;;  %v1936_v52 = vsel %vm485_vm2, %v520_v49, %v461_v50  ;;  %v508_v0 = vsel %vm482_vm1, %v506_v61, %v461_v50 }
 0x3cc   :  { %v463_v54 = vpop.permute.xlu1 %462  ;;  %v483_v57 = vsel %vm482_vm1, %v480_v43, %v469_v46 }
 0x3cd   :  { %v1941_v56 = vsel %vm485_vm2, %v521_v36, %v463_v54  ;;  %v481_v62 = vsel %vm199_vm0, %v1395_v22, %v463_v54  ;;  %v509_v8 = vsel %vm482_vm1, %v507_v7, %v463_v54  ;;  %v78_v36 = vld [vmem:[#allocation5 + $0x130] sm:$0xff]  ;;  %v528_v54 = vadd.f32 %v527_v47, %v1936_v52 }
 0x3ce   :  { %v475_v58 = vpop.permute.xlu0 %474  ;;  %v484_v3 = vsel %vm482_vm1, %v481_v62, %v471_v39  ;;  %v1590_v46 = vpack.c.bf16 %v79_v45, %v78_v36  ;;  %v529_v51 = vadd.f32 %v527_v47, %v1941_v56  ;;  %v646_v56 = vrot.slane %v1938_v55, %v275_v19 }
 0x3cf   :  { %v486_v63 = vsel %vm485_vm2, %v483_v57, %v475_v58 }
 0x3d0   :  { %v501_v1 = vpop.permute.xlu1 %500  ;;  %v492_v5 = vadd.f32 %v491_v59, %v486_v63  ;;  %1591 = vmatprep.subr.bf16.mxu0 %v1590_v46 }
 0x3d1   :  { %v510_v2 = vsel %vm485_vm2, %v508_v0, %v501_v1  ;;  %1593 = vmatpush3.bf16.msra.mxu0 %v1590_v46 }
 0x3d2   :  { %v477_v4 = vpop.permute.xlu0 %476  ;;  %v516_v6 = vadd.f32 %v515_v60, %v510_v2 }
 0x3d3   :  { %v487_v30 = vsel %vm485_vm2, %v484_v3, %v477_v4 }
 0x3d4   :  { %v503_v9 = vpop.permute.xlu1 %502  ;;  %v530_v10 = vmul.f32 %v516_v6, %v492_v5  ;;  %v493_v12 = vadd.f32 %v491_v59, %v487_v30 }
 0x3d5   :  { %v511_v11 = vsel %vm485_vm2, %v509_v8, %v503_v9  ;;  %v80_v8 = vld [vmem:[#allocation5 + $0x140] sm:$0xff]  ;;  %v81_v9 = vld [vmem:[#allocation5 + $0x148] sm:$0xff] }
 0x3d6   :  { %v517_v13 = vadd.f32 %v515_v60, %v511_v11  ;;  %1431 = vmatprep.mubr.f32.mxu1 %v530_v10  ;;  %v1594_v10 = vpack.c.bf16 %v81_v9, %v80_v8  ;;  %v82_v11 = vld [vmem:[#allocation5 + $0x150] sm:$0xff] }
 0x3d8   :  { %v531_v14 = vmul.f32 %v517_v13, %v493_v12  ;;  %v83_v12 = vld [vmem:[#allocation5 + $0x158] sm:$0xff]  ;;  %1595 = vmatprep.subr.bf16.mxu0 %v1594_v10 }
 0x3d9   :  { %v1598_v13 = vpack.c.bf16 %v83_v12, %v82_v11 }
 0x3da   :  { %1432 = vmatmul.mubr.f32.vlgmr.msra.gmra.mrb[0].mxu1 %v531_v14 }
 0x4ad   :  { %v1433_v15 = vpop.f32.mrb[0].mxu1 }
 0x4ae   :  { %609 = vrot.lane.b32.xlu1 %v1433_v15, %s1779_s1  ;;  %v598_v17 = vpop.f32.mrb[1].mxu1 }
 0x4af   :  { %607 = vrot.lane.b32.xlu0 %v598_v17, %s1779_s1 }
 0x520   :  { %v610_v18 = vpop.permute.xlu1 %609 }
 0x521   :  { %v612_v20 = vmax.f32 %v1433_v15, %v610_v18  ;;  %v608_v21 = vpop.permute.xlu0 %607 }
 0x522   :  { %v611_v22 = vmax.f32 %v598_v17, %v608_v21 }
 0x523   :  { %v614_v23 = vsub.f32 %v1433_v15, %v612_v20 }
 0x524   :  { %v613_v24 = vsub.f32 %v598_v17, %v611_v22 }
 0x525   :  { %v617_v25 = vmul.f32 1.442695, %v614_v23 }
 0x526   :  { %v615_v26 = vmul.f32 1.442695, %v613_v24 }
 0x527   :  { %1671 = vpow2.f32 %v617_v25 }
 0x528   :  { %1673 = vpow2.f32 %v615_v26 }
 0x531   :  { %v1672_v27 = vpop.eup %1671 }
 0x532   :  { %v1674_v28 = vpop.eup %1673  ;;  %621 = vrot.lane.b32.xlu1 %v1672_v27, %s1779_s1 }
 0x533   :  { %619 = vrot.lane.b32.xlu0 %v1674_v28, %s1779_s1 }
 0x5a4   :  { %v622_v38 = vpop.permute.xlu1 %621 }
 0x5a5   :  { %v624_v39 = vadd.f32 %v1672_v27, %v622_v38  ;;  %v620_v40 = vpop.permute.xlu0 %619 }
 0x5a6   :  { %v623_v42 = vadd.f32 %v1674_v28, %v620_v40 }
 0x5a7   :  { %1675 = vrcp.f32 %v624_v39 }
 0x5a8   :  { %1677 = vrcp.f32 %v623_v42 }
 0x5b1   :  { %v1676_v49 = vpop.eup %1675 }
 0x5b2   :  { %v1678_v50 = vpop.eup %1677  ;;  %v628_v43 = vmul.f32 %v1676_v49, %v1672_v27 }
 0x5b3   :  { %v627_v57 = vmul.f32 %v1678_v50, %v1674_v28  ;;  %v84_v28 = vld [vmem:[#allocation5 + $0x160] sm:$0xff] }
 0x5b4   :  { %v630_v58 = vmul.f32 %v628_v43, %v529_v51  ;;  %v1634_v34 = vpack.c.bf16 %v85_v32, %v84_v28 }
 0x5b5   :  { %v629_v59 = vmul.f32 %v627_v57, %v528_v54  ;;  %v810_v57 = vsub.s32 5, %v1829_v29 }
 0x5b6   :  { %633 = vrot.lane.b32.xlu1 %v630_v58, %s1779_s1 }
 0x5b7   :  { %631 = vrot.lane.b32.xlu0 %v629_v59, %s1779_s1 }
 0x628   :  { %v634_v60 = vpop.permute.xlu1 %633 }
 0x629   :  { %v636_v61 = vadd.f32 %v634_v60, %v630_v58  ;;  %v632_v62 = vpop.permute.xlu0 %631  ;;  %v811_v60 = vrot.slane %v1832_v31, %v810_v57  ;;  %v97_v57 = vld [vmem:[#allocation5 + $0x1c8] sm:$0xff] }
 0x62a   :  { %v635_v63 = vadd.f32 %v632_v62, %v629_v59  ;;  %v818_v62 = vsub.s32 6, %v1829_v29 }
 0x62b   :  { %641 = vrot.lane.b32.xlu1 %v636_v61, %s1780_s6 }
 0x62c   :  { %639 = vrot.lane.b32.xlu0 %v635_v63, %s1780_s6  ;;  %1442 = vmatprep.mubr.msk.f32.mxu0 %vm199_vm0, %v635_v63 }
 0x62d   :  { %1443 = vmatmul.mubr.msk.f32.vlgmr.msra.gmra.mrb[8].mxu0 %vm199_vm0, %v636_v61 }
 0x62e   :  { %1597 = vmatpush3.bf16.msra.mxu0 %v1594_v10 }
 0x62f   :  { %1599 = vmatprep.subr.bf16.mxu0 %v1598_v13 }
 0x632   :  { %1601 = vmatpush3.bf16.msra.mxu0 %v1598_v13 }
 0x633   :  { %1635 = vmatprep.subr.bf16.mxu0 %v1634_v34 }
 0x69d   :  { %v642_v52 = vpop.permute.xlu1 %641 }
 0x69e   :  { %v640_v16 = vpop.permute.xlu0 %639 }
 0x69f   :  { %1445 = vmatprep.mubr.msk.f32.mxu0 %vm199_vm0, %v640_v16 }
 0x6a0   :  { %1446 = vmatmul.mubr.msk.f32.gmra.mrb[10].mxu0 %vm199_vm0, %v642_v52 }
 0x700   :  { %v1444_v0 = vpop.f32.mrb[8].mxu0 }
 0x701   :  { %v727_v1 = vadd.f32 %v1444_v0, %v646_v56  ;;  %v721_v2 = vpop.f32.mrb[9].mxu0  ;;  %v819_v0 = vrot.slane %v1832_v31, %v818_v62 }
 0x702   :  { %v722_v3 = vadd.f32 %v721_v2, %v646_v56  ;;  %v86_v2 = vld [vmem:[#allocation5 + $0x170] sm:$0xff] }
 0x703   :  { %v1979_v4 = vadd.f32 %v727_v1, %v1875_v35 }
 0x704   :  { %v1982_v5 = vadd.f32 %v722_v3, %v1882_v41  ;;  %v87_v3 = vld [vmem:[#allocation5 + $0x178] sm:$0xff] }
 0x705   :  { %v747_v6 = vsel %vm199_vm0, %v1979_v4, 0.0  ;;  %v761_v19 = vmul.f32 %v1979_v4, %v1979_v4 }
 0x706   :  { %748 = vadd.xlane.f32.xlu1 %v747_v6  ;;  %v744_v7 = vsel %vm199_vm0, %v1982_v5, 0.0  ;;  %v760_v35 = vmul.f32 %v1982_v5, %v1982_v5 }
 0x707   :  { %745 = vadd.xlane.f32.xlu0 %v744_v7  ;;  %v767_v30 = vsel %vm199_vm0, %v761_v19, 0.0  ;;  %v1638_v19 = vpack.c.bf16 %v87_v3, %v86_v2 }
 0x708   :  { %v764_v41 = vsel %vm199_vm0, %v760_v35, 0.0 }
 0x70b   :  { %768 = vadd.xlane.f32.xlu0 %v767_v30 }
 0x70f   :  { %765 = vadd.xlane.f32.xlu0 %v764_v41 }
 0x773   :  { %v1447_v14 = vpop.f32.mrb[10].mxu0 }
 0x774   :  { %v737_v15 = vadd.f32 %v1447_v14, %v646_v56  ;;  %v731_v17 = vpop.f32.mrb[11].mxu0 }
 0x775   :  { %v732_v18 = vadd.f32 %v731_v17, %v646_v56 }
 0x776   :  { %v1995_v20 = vadd.f32 %v737_v15, %v1893_v44 }
 0x777   :  { %v1998_v21 = vadd.f32 %v732_v18, %v1891_v53 }
 0x778   :  { %v753_v22 = vsel %vm199_vm0, %v1995_v20, 0.0  ;;  %v763_v23 = vmul.f32 %v1995_v20, %v1995_v20 }
 0x779   :  { %754 = vadd.xlane.f32.xlu1 %v753_v22  ;;  %v750_v24 = vsel %vm199_vm0, %v1998_v21, 0.0  ;;  %v762_v25 = vmul.f32 %v1998_v21, %v1998_v21 }
 0x77a   :  { %751 = vadd.xlane.f32.xlu0 %v750_v24  ;;  %v773_v44 = vsel %vm199_vm0, %v763_v23, 0.0 }
 0x77b   :  { %v770_v53 = vsel %vm199_vm0, %v762_v25, 0.0  ;;  %v88_v25 = vld [vmem:[#allocation5 + $0x180] sm:$0xff] }
 0x77d   :  { %774 = vadd.xlane.f32.xlu1 %v773_v44  ;;  %v89_v44 = vld [vmem:[#allocation5 + $0x188] sm:$0xff] }
 0x77e   :  { %771 = vadd.xlane.f32.xlu0 %v770_v53 }
 0x793   :  { %v749_v26 = vpop.xlane.xlu1 %748 }
 0x794   :  { %v746_v27 = vpop.xlane.xlu0 %745  ;;  %v757_v33 = vmul.f32 0.03125, %v749_v26 }
 0x795   :  { %v756_v40 = vmul.f32 0.03125, %v746_v27  ;;  %v1602_v27 = vpack.c.bf16 %v89_v44, %v88_v25 }
 0x796   :  { %v781_v39 = vmul.f32 %v757_v33, %v757_v33  ;;  %v793_v59 = vsub.f32 %v1979_v4, %v757_v33 }
 0x797   :  { %v780_v46 = vmul.f32 %v756_v40, %v756_v40  ;;  %v792_v63 = vsub.f32 %v1982_v5, %v756_v40  ;;  %1603 = vmatprep.subr.bf16.mxu1 %v1602_v27 }
 0x798   :  { %v769_v38 = vpop.xlane.xlu0 %768  ;;  %1605 = vmatpush3.bf16.msra.mxu1 %v1602_v27 }
 0x799   :  { %v777_v42 = vmul.f32 0.03125, %v769_v38  ;;  %v90_v38 = vld [vmem:[#allocation5 + $0x190] sm:$0xff] }
 0x79b   :  { %v785_v36 = vsub.f32 %v777_v42, %v781_v39  ;;  %v91_v39 = vld [vmem:[#allocation5 + $0x198] sm:$0xff] }
 0x79c   :  { %v766_v45 = vpop.xlane.xlu0 %765  ;;  %v1606_v42 = vpack.c.bf16 %v91_v39, %v90_v38 }
 0x79d   :  { %v789_v47 = vmax.f32 %v785_v36, 0.0  ;;  %v776_v49 = vmul.f32 0.03125, %v766_v45 }
 0x79e   :  { %1607 = vmatprep.subr.bf16.mxu1 %v1606_v42 }
 0x79f   :  { %v797_v50 = vadd.f32 1e-05, %v789_v47  ;;  %v784_v51 = vsub.f32 %v776_v49, %v780_v46  ;;  %1609 = vmatpush3.bf16.msra.mxu1 %v1606_v42  ;;  %v92_v46 = vld [vmem:[#allocation5 + $0x1a0] sm:$0xff]  ;;  %v93_v47 = vld [vmem:[#allocation5 + $0x1a8] sm:$0xff] }
 0x7a0   :  { %v1610_v49 = vpack.c.bf16 %v93_v47, %v92_v46  ;;  %v1782_v47 = vmov -1.0  }
 0x7a1   :  { %1679 = vrsqrt.f32 %v797_v50  ;;  %v788_v43 = vmax.f32 %v784_v51, 0.0  ;;  %v94_v50 = vld [vmem:[#allocation5 + $0x1b0] sm:$0xff]  ;;  %v95_v51 = vld [vmem:[#allocation5 + $0x1b8] sm:$0xff] }
 0x7a2   :  { %1611 = vmatprep.subr.bf16.mxu1 %v1610_v49 }
 0x7a3   :  { %v796_v54 = vadd.f32 1e-05, %v788_v43  ;;  %1613 = vmatpush3.bf16.msra.mxu1 %v1610_v49  ;;  %v1614_v43 = vpack.c.bf16 %v95_v51, %v94_v50 }
 0x7a5   :  { %1681 = vrsqrt.f32 %v796_v54  ;;  %1615 = vmatprep.subr.bf16.mxu1 %v1614_v43  ;;  %v96_v54 = vld [vmem:[#allocation5 + $0x1c0] sm:$0xff] }
 0x7a7   :  { %1617 = vmatpush3.bf16.msra.mxu1 %v1614_v43 }
 0x7ab   :  { %v1680_v58 = vpop.eup %1679 }
 0x7ac   :  { %v805_v61 = vmul.f32 %v1680_v58, %v793_v59  ;;  %v1618_v58 = vpack.c.bf16 %v97_v57, %v96_v54  ;;  %v99_v59 = vld [vmem:[#allocation5 + $0x1d8] sm:$0xff] }
 0x7ae   :  { %v813_v56 = vmul.f32 %v811_v60, %v805_v61  ;;  %1619 = vmatprep.subr.bf16.mxu1 %v1618_v58  ;;  %v100_v61 = vld [vmem:[#allocation5 + $0x1e0] sm:$0xff] }
 0x7af   :  { %v1682_v16 = vpop.eup %1681  ;;  %1621 = vmatpush3.bf16.msra.mxu1 %v1618_v58 }
 0x7b0   :  { %v804_v52 = vmul.f32 %v1682_v16, %v792_v63  ;;  %v821_v7 = vadd.f32 %v819_v0, %v813_v56  ;;  %v103_v63 = vld [vmem:[#allocation5 + $0x1f8] sm:$0xff] }
 0x7b2   :  { %v812_v1 = vmul.f32 %v811_v60, %v804_v52 }
 0x7b4   :  { %v820_v6 = vadd.f32 %v819_v0, %v812_v1 }
 0x7b6   :  { %1456 = vmatprep.mubr.msk.f32.mxu0 %vm199_vm0, %v820_v6 }
 0x7b7   :  { %1457 = vmatmul.mubr.msk.f32.vlgmr.msra.gmra.mrb[12].mxu0 %vm199_vm0, %v821_v7 }
 0x7b8   :  { %1637 = vmatpush3.bf16.msra.mxu0 %v1634_v34 }
 0x7b9   :  { %1639 = vmatprep.subr.bf16.mxu0 %v1638_v19 }
 0x7bc   :  { %1641 = vmatpush3.bf16.msra.mxu0 %v1638_v19 }
 0x806   :  { %v755_v30 = vpop.xlane.xlu1 %754 }
 0x807   :  { %v759_v35 = vmul.f32 0.03125, %v755_v30  ;;  %v752_v41 = vpop.xlane.xlu0 %751 }
 0x808   :  { %v758_v8 = vmul.f32 0.03125, %v752_v41 }
 0x809   :  { %v783_v10 = vmul.f32 %v759_v35, %v759_v35  ;;  %v795_v24 = vsub.f32 %v1995_v20, %v759_v35 }
 0x80a   :  { %v775_v9 = vpop.xlane.xlu1 %774  ;;  %v782_v12 = vmul.f32 %v758_v8, %v758_v8  ;;  %v794_v26 = vsub.f32 %v1998_v21, %v758_v8 }
 0x80b   :  { %v779_v31 = vmul.f32 0.03125, %v775_v9  ;;  %v772_v11 = vpop.xlane.xlu0 %771 }
 0x80c   :  { %v778_v13 = vmul.f32 0.03125, %v772_v11 }
 0x80d   :  { %v787_v14 = vsub.f32 %v779_v31, %v783_v10 }
 0x80e   :  { %v786_v15 = vsub.f32 %v778_v13, %v782_v12 }
 0x80f   :  { %v791_v17 = vmax.f32 %v787_v14, 0.0 }
 0x810   :  { %v790_v18 = vmax.f32 %v786_v15, 0.0 }
 0x811   :  { %v799_v22 = vadd.f32 1e-05, %v791_v17 }
 0x812   :  { %v798_v23 = vadd.f32 1e-05, %v790_v18 }
 0x813   :  { %1683 = vrsqrt.f32 %v799_v22 }
 0x814   :  { %1685 = vrsqrt.f32 %v798_v23 }
 0x81d   :  { %v1684_v53 = vpop.eup %1683 }
 0x81e   :  { %v1686_v28 = vpop.eup %1685  ;;  %v807_v32 = vmul.f32 %v1684_v53, %v795_v24 }
 0x81f   :  { %v806_v33 = vmul.f32 %v1686_v28, %v794_v26 }
 0x820   :  { %v815_v34 = vmul.f32 %v811_v60, %v807_v32 }
 0x821   :  { %v814_v40 = vmul.f32 %v811_v60, %v806_v33 }
 0x822   :  { %v823_v45 = vadd.f32 %v819_v0, %v815_v34 }
 0x823   :  { %v822_v36 = vadd.f32 %v819_v0, %v814_v40 }
 0x825   :  { %1459 = vmatprep.mubr.msk.f32.mxu0 %vm199_vm0, %v822_v36 }
 0x826   :  { %1460 = vmatmul.mubr.msk.f32.gmra.mrb[14].mxu0 %vm199_vm0, %v823_v45 }
 0x827   :  { %1508 = vmatprep.mubr.msk.f32.mxu0 %vm199_vm0, %v1982_v5  ;;  %v98_v5 = vld [vmem:[#allocation5 + $0x1d0] sm:$0xff] }
 0x828   :  { %v1622_v60 = vpack.c.bf16 %v99_v59, %v98_v5 }
 0x82a   :  { %1509 = vmatmul.mubr.msk.f32.vlgmr.msra.gmra.mrb[16].mxu0 %vm199_vm0, %v1979_v4  ;;  %1623 = vmatprep.subr.bf16.mxu1 %v1622_v60  ;;  %v101_v4 = vld [vmem:[#allocation5 + $0x1e8] sm:$0xff] }
 0x82b   :  { %1511 = vmatprep.mubr.msk.f32.mxu0 %vm199_vm0, %v1998_v21  ;;  %1625 = vmatpush3.bf16.msra.mxu1 %v1622_v60  ;;  %v1626_v62 = vpack.c.bf16 %v101_v4, %v100_v61  ;;  %v102_v21 = vld [vmem:[#allocation5 + $0x1f0] sm:$0xff] }
 0x82c   :  { %v1630_v16 = vpack.c.bf16 %v103_v63, %v102_v21 }
 0x82d   :  { %1627 = vmatprep.subr.bf16.mxu1 %v1626_v62 }
 0x82e   :  { %1512 = vmatmul.mubr.msk.f32.gmra.mrb[18].mxu0 %vm199_vm0, %v1995_v20  ;;  %v2033_v20 = vrot.slane %v1938_v55, %v347_v37 }
 0x82f   :  { %1629 = vmatpush3.bf16.msra.mxu1 %v1626_v62 }
 0x830   :  { %1631 = vmatprep.subr.bf16.mxu1 %v1630_v16 }
 0x833   :  { %1633 = vmatpush3.bf16.msra.mxu1 %v1630_v16 }
 0x88a   :  { %v1458_v52 = vpop.f32.mrb[12].mxu0 }
 0x88b   :  { %v912_v56 = vadd.f32 %v1458_v52, %v2033_v20  ;;  %v906_v0 = vpop.f32.mrb[13].mxu0 }
 0x88c   :  { %v907_v1 = vadd.f32 %v906_v0, %v2033_v20 }
 0x88d   :  { %v930_v2 = vmul.f32 0.70710677, %v912_v56  ;;  %v926_v59 = vmul.f32 0.5, %v912_v56 }
 0x88e   :  { %v929_v3 = vmul.f32 0.70710677, %v907_v1  ;;  %v925_v58 = vmul.f32 0.5, %v907_v1 }
 0x88f   :  { %v942_v6 = vand.u32 2147483647, %v930_v2  ;;  %vm934_vm3 = vcmp.ge.f32.partialorder %v930_v2, 0.0 }
 0x890   :  { %v941_v7 = vand.u32 2147483647, %v929_v3  ;;  %vm933_vm4 = vcmp.ge.f32.partialorder %v929_v3, 0.0  ;;  %v938_v49 = vsel %vm934_vm3, 1.0, %v1782_v47 }
 0x891   :  { %v946_v19 = vmul.f32 0.3275911, %v942_v6  ;;  %v994_v8 = vsub.f32 0.0, %v942_v6  ;;  %v937_v43 = vsel %vm933_vm4, 1.0, %v1782_v47 }
 0x892   :  { %v945_v30 = vmul.f32 0.3275911, %v941_v7  ;;  %v993_v9 = vsub.f32 0.0, %v941_v7 }
 0x893   :  { %v950_v35 = vadd.f32 1.0, %v946_v19  ;;  %v998_v10 = vmul.f32 %v994_v8, %v942_v6 }
 0x894   :  { %v949_v41 = vadd.f32 1.0, %v945_v30  ;;  %v997_v12 = vmul.f32 %v993_v9, %v941_v7 }
 0x895   :  { %1687 = vrcp.f32 %v950_v35  ;;  %v1003_v15 = vmul.f32 1.442695, %v998_v10 }
 0x896   :  { %1689 = vrcp.f32 %v949_v41  ;;  %v1001_v22 = vmul.f32 1.442695, %v997_v12 }
 0x897   :  { %1691 = vpow2.f32 %v1003_v15 }
 0x898   :  { %1693 = vpow2.f32 %v1001_v22 }
 0x89f   :  { %v1688_v37 = vpop.eup %1687 }
 0x8a0   :  { %v1690_v31 = vpop.eup %1689  ;;  %v958_v11 = vmul.f32 1.0614054, %v1688_v37 }
 0x8a1   :  { %v957_v13 = vmul.f32 1.0614054, %v1690_v31  ;;  %v1692_v39 = vpop.eup %1691 }
 0x8a2   :  { %v962_v14 = vadd.f32 -1.4531521, %v958_v11  ;;  %v1694_v42 = vpop.eup %1693 }
 0x8a3   :  { %v961_v17 = vadd.f32 -1.4531521, %v957_v13 }
 0x8a4   :  { %v966_v18 = vmul.f32 %v1688_v37, %v962_v14 }
 0x8a5   :  { %v965_v23 = vmul.f32 %v1690_v31, %v961_v17 }
 0x8a6   :  { %v970_v24 = vadd.f32 1.4214138, %v966_v18 }
 0x8a7   :  { %v969_v25 = vadd.f32 1.4214138, %v965_v23 }
 0x8a8   :  { %v974_v44 = vmul.f32 %v1688_v37, %v970_v24 }
 0x8a9   :  { %v973_v53 = vmul.f32 %v1690_v31, %v969_v25 }
 0x8aa   :  { %v978_v26 = vadd.f32 -0.28449672, %v974_v44 }
 0x8ab   :  { %v977_v27 = vadd.f32 -0.28449672, %v973_v53 }
 0x8ac   :  { %v982_v28 = vmul.f32 %v1688_v37, %v978_v26 }
 0x8ad   :  { %v981_v32 = vmul.f32 %v1690_v31, %v977_v27 }
 0x8ae   :  { %v986_v33 = vadd.f32 0.2548296, %v982_v28 }
 0x8af   :  { %v985_v34 = vadd.f32 0.2548296, %v981_v32 }
 0x8b0   :  { %v990_v38 = vmul.f32 %v1688_v37, %v986_v33 }
 0x8b1   :  { %v989_v40 = vmul.f32 %v1690_v31, %v985_v34 }
 0x8b2   :  { %v1010_v36 = vmul.f32 %v1692_v39, %v990_v38 }
 0x8b3   :  { %v1009_v45 = vmul.f32 %v1694_v42, %v989_v40 }
 0x8b4   :  { %v1014_v46 = vsub.f32 1.0, %v1010_v36 }
 0x8b5   :  { %v1013_v50 = vsub.f32 1.0, %v1009_v45 }
 0x8b6   :  { %v1018_v51 = vmul.f32 %v1014_v46, %v938_v49 }
 0x8b7   :  { %v1017_v54 = vmul.f32 %v1013_v50, %v937_v43 }
 0x8b8   :  { %v1022_v57 = vadd.f32 1.0, %v1018_v51 }
 0x8b9   :  { %v1021_v5 = vadd.f32 1.0, %v1017_v54 }
 0x8ba   :  { %v1026_v61 = vmul.f32 %v1022_v57, %v926_v59 }
 0x8bb   :  { %v1025_v60 = vmul.f32 %v1021_v5, %v925_v58 }
 0x8bd   :  { %1494 = vmatprep.mubr.f32.mxu1 %v1025_v60  ;;  %v1214_v60 = vrot.slane %v1938_v55, %v355_v48 }
 0x8be   :  { %1495 = vmatmul.mubr.f32.vlgmr.msra.gmra.mrb[2].mxu1 %v1026_v61 }
 0x8f9   :  { %v1461_v4 = vpop.f32.mrb[14].mxu0 }
 0x8fa   :  { %v922_v62 = vadd.f32 %v1461_v4, %v2033_v20  ;;  %v916_v21 = vpop.f32.mrb[15].mxu0 }
 0x8fb   :  { %v917_v63 = vadd.f32 %v916_v21, %v2033_v20 }
 0x8fc   :  { %v932_v16 = vmul.f32 0.70710677, %v922_v62  ;;  %v928_v58 = vmul.f32 0.5, %v922_v62 }
 0x8fd   :  { %v931_v52 = vmul.f32 0.70710677, %v917_v63  ;;  %v1510_v0 = vpop.f32.mrb[16].mxu0  ;;  %v927_v54 = vmul.f32 0.5, %v917_v63 }
 0x8fe   :  { %v944_v2 = vand.u32 2147483647, %v932_v16  ;;  %v1192_v3 = vpop.f32.mrb[17].mxu0  ;;  %vm936_vm5 = vcmp.ge.f32.partialorder %v932_v16, 0.0 }
 0x8ff   :  { %v943_v6 = vand.u32 2147483647, %v931_v52  ;;  %vm935_vm6 = vcmp.ge.f32.partialorder %v931_v52, 0.0  ;;  %v940_v45 = vsel %vm936_vm5, 1.0, %v1782_v47 }
 0x900   :  { %v948_v7 = vmul.f32 0.3275911, %v944_v2  ;;  %v996_v41 = vsub.f32 0.0, %v944_v2  ;;  %v939_v49 = vsel %vm935_vm6, 1.0, %v1782_v47 }
 0x901   :  { %v947_v1 = vmul.f32 0.3275911, %v943_v6  ;;  %v2041_v19 = vpop.f32.mrb[18].mxu0  ;;  %v995_v8 = vsub.f32 0.0, %v943_v6 }
 0x902   :  { %v952_v56 = vadd.f32 1.0, %v948_v7  ;;  %v2043_v30 = vpop.f32.mrb[19].mxu0  ;;  %v1000_v20 = vmul.f32 %v996_v41, %v944_v2 }
 0x903   :  { %v951_v35 = vadd.f32 1.0, %v947_v1  ;;  %v999_v10 = vmul.f32 %v995_v8, %v943_v6 }
 0x904   :  { %1695 = vrcp.f32 %v952_v56  ;;  %v1007_v13 = vmul.f32 1.442695, %v1000_v20 }
 0x905   :  { %1697 = vrcp.f32 %v951_v35  ;;  %v1005_v15 = vmul.f32 1.442695, %v999_v10 }
 0x906   :  { %1699 = vpow2.f32 %v1007_v13 }
 0x907   :  { %1701 = vpow2.f32 %v1005_v15 }
 0x90e   :  { %v1696_v9 = vpop.eup %1695 }
 0x90f   :  { %v1698_v37 = vpop.eup %1697  ;;  %v960_v31 = vmul.f32 1.0614054, %v1696_v9 }
 0x910   :  { %v959_v11 = vmul.f32 1.0614054, %v1698_v37  ;;  %v1700_v34 = vpop.eup %1699 }
 0x911   :  { %v964_v12 = vadd.f32 -1.4531521, %v960_v31  ;;  %v1702_v39 = vpop.eup %1701 }
 0x912   :  { %v963_v14 = vadd.f32 -1.4531521, %v959_v11 }
 0x913   :  { %v968_v17 = vmul.f32 %v1696_v9, %v964_v12 }
 0x914   :  { %v967_v18 = vmul.f32 %v1698_v37, %v963_v14 }
 0x915   :  { %v972_v22 = vadd.f32 1.4214138, %v968_v17 }
 0x916   :  { %v971_v23 = vadd.f32 1.4214138, %v967_v18 }
 0x917   :  { %v976_v24 = vmul.f32 %v1696_v9, %v972_v22 }
 0x918   :  { %v975_v25 = vmul.f32 %v1698_v37, %v971_v23 }
 0x919   :  { %v980_v44 = vadd.f32 -0.28449672, %v976_v24 }
 0x91a   :  { %v979_v53 = vadd.f32 -0.28449672, %v975_v25 }
 0x91b   :  { %v984_v26 = vmul.f32 %v1696_v9, %v980_v44 }
 0x91c   :  { %v983_v27 = vmul.f32 %v1698_v37, %v979_v53 }
 0x91d   :  { %v988_v28 = vadd.f32 0.2548296, %v984_v26 }
 0x91e   :  { %v987_v32 = vadd.f32 0.2548296, %v983_v27 }
 0x91f   :  { %v992_v33 = vmul.f32 %v1696_v9, %v988_v28 }
 0x920   :  { %v991_v38 = vmul.f32 %v1698_v37, %v987_v32 }
 0x921   :  { %v1012_v40 = vmul.f32 %v1700_v34, %v992_v33 }
 0x922   :  { %v1011_v42 = vmul.f32 %v1702_v39, %v991_v38 }
 0x923   :  { %v1016_v36 = vsub.f32 1.0, %v1012_v40 }
 0x924   :  { %v1015_v46 = vsub.f32 1.0, %v1011_v42 }
 0x925   :  { %v1020_v50 = vmul.f32 %v1016_v36, %v940_v45 }
 0x926   :  { %v1019_v51 = vmul.f32 %v1015_v46, %v939_v49 }
 0x927   :  { %v1024_v43 = vadd.f32 1.0, %v1020_v50 }
 0x928   :  { %v1023_v57 = vadd.f32 1.0, %v1019_v51 }
 0x929   :  { %v1028_v59 = vmul.f32 %v1024_v43, %v928_v58 }
 0x92a   :  { %v1027_v5 = vmul.f32 %v1023_v57, %v927_v54 }
 0x92c   :  { %1497 = vmatprep.mubr.f32.mxu1 %v1027_v5 }
 0x92d   :  { %1498 = vmatmul.mubr.f32.gmra.mrb[4].mxu1 %v1028_v59 }
 0x991   :  { %v1496_v61 = vpop.f32.mrb[2].mxu1 }
 0x992   :  { %v1198_v4 = vadd.f32 %v1510_v0, %v1496_v61  ;;  %v1095_v21 = vpop.f32.mrb[3].mxu1 }
 0x993   :  { %v1193_v16 = vadd.f32 %v1192_v3, %v1095_v21 }
 0x994   :  { %v1216_v52 = vadd.f32 %v1214_v60, %v1198_v4 }
 0x995   :  { %v1215_v47 = vadd.f32 %v1214_v60, %v1193_v16 }
 0x996   :  { %1220 = vst [vmem:[#allocation7 + $0x8] sm:$0xff] %v1216_v52 }
 0x997   :  { %1219 = vst [vmem:[#allocation7] sm:$0xff] %v1215_v47 }
 0xa00   :  { %v1499_v2 = vpop.f32.mrb[4].mxu1 }
 0xa01   :  { %v1208_v63 = vadd.f32 %v2041_v19, %v1499_v2  ;;  %v1105_v62 = vpop.f32.mrb[5].mxu1 }
 0xa02   :  { %v1203_v6 = vadd.f32 %v2043_v30, %v1105_v62 }
 0xa03   :  { %v1218_v7 = vadd.f32 %v1214_v60, %v1208_v63 }
 0xa04   :  { %v1217_v29 = vadd.f32 %v1214_v60, %v1203_v6 }
 0xa05   :  { %1222 = vst [vmem:[#allocation7 + $0x18] sm:$0xff] %v1218_v7 }
 0xa06   :  { %1221 = vst [vmem:[#allocation7 + $0x10] sm:$0xff] %v1217_v29 }
 0xa07   :  { %1758 = shalt.err (!%p1755_p6)
}
 0xa08   :  { %s1759_s13 = scalar_lea.hbm %s2069_s2, 512 }
 0xa09   :  { %p1760_p7 = scmp.ne.s32.totalorder %s2069_s2, %s1759_s13  ;;  %p1763_p8 = scmp.lt.u32.totalorder %s1759_s13, %s2069_s2 }
 0xa0b   :  { %p1765_p9 = pnand %p1763_p8, %p1760_p7 }
 0xa0d   :  { %1768 = shalt.err (!%p1765_p9)
}
 0xa0e   :  { %1234 = dma.vmem_to_hbm [thread:$0]  %s1229_s9, 512, %s2069_s2, [#allocation4], %s1776_s19, %s1776_s19, %s1777_s20  }
 0xa0f   :  { %1773 = dma.done.wait [#allocation4], 512  }
 0xa10   :  { %1774 = vsyncadd [#allocation4], 4294966784 }
 0xa11   :  { %1238 = vsyncpa [#allocation3], 1 }
 0xa12   :  { %1239 = vsyncpa [#allocation6], 1 }
 0xa13   :  { %1240 = vsyncpa [#allocation4], 1 }

</bundles_post_ra>
